<compile_context>
chip_gen: v7x
topology: tpu7x:2x2x1
jax: 0.10.0
libtpu: 0.0.40
codegen_flags: <defaults>
</compile_context>

<pallas_src>
import math

import numpy as np
import jax
import jax.numpy as jnp
from jax import lax
from jax.experimental import pallas as pl
from jax.experimental.pallas import tpu as pltpu


def _round_up(x, m):
    return (x + m - 1) // m * m


def _make_fused_msd_kernel(layer_cfgs, ksize, H, W, PF, C_total, res_dtype):
    """Fused MS-D forward kernel body (one batch element per grid step).

    layer_cfgs: list of static (dilation, cur_c, growth) tuples.
    Refs (in order):
      x_ref                          : (1, Cin, H*W)
      per layer: w_ref (k*k, g, cur_c), b_ref (g, 1)   [w in res_dtype, b f32]
      w_last_ref (Cout, C_total), b_last_ref (Cout, 1)
      o_ref                          : (1, Cout, H*W)
      res_ref (VMEM scratch)         : (C_total, PF + H*W + PF) in res_dtype
    """
    HW = H * W
    num_layers = len(layer_cfgs)
    center = (ksize - 1) // 2

    # Distinct horizontal tap shifts (static) -> one mask each, shared by all
    # layers with the same dilation and by all kh rows of a tap column.
    needed_dws = sorted({(kw - center) * dil
                         for (dil, _, _) in layer_cfgs
                         for kw in range(ksize)} - {0})

    def kernel(*refs):
        x_ref = refs[0]
        layer_refs = refs[1:1 + 2 * num_layers]
        w_last_ref = refs[1 + 2 * num_layers]
        b_last_ref = refs[2 + 2 * num_layers]
        o_ref = refs[3 + 2 * num_layers]
        res_ref = refs[4 + 2 * num_layers]

        cin = x_ref.shape[1]

        # ---- residency init (halo-only zeroing) -----------------------------
        # Only the two PF-wide halo strips must be zero: they are read by the
        # dilated taps with non-zero weights but never written.  Every data
        # row [0:cur) read by a layer is written earlier in the SAME grid
        # step (input rows now, layer outputs below), so no full-buffer memset
        # and no reliance on stale data / zero weight columns is needed.
        res_ref[:, 0:PF] = jnp.zeros((C_total, PF), res_dtype)
        res_ref[:, PF + HW:PF + HW + PF] = jnp.zeros((C_total, PF), res_dtype)
        res_ref[0:cin, PF:PF + HW] = x_ref[0].astype(res_dtype)

        # ---- hoisted column-wrap masks (built once, f32) --------------------
        col = lax.broadcasted_iota(jnp.int32, (1, HW), 1) % W
        shift_mask = {}
        for dwv in needed_dws:
            if dwv < 0:
                m = col >= -dwv          # valid when reading column col + dwv
            else:
                m = col < (W - dwv)
            shift_mask[dwv] = m.astype(jnp.float32)

        # ---- dilated kxk layers (unrolled; see TODO about a layer grid axis)
        for li, (dil, cur_c, growth) in enumerate(layer_cfgs):
            w_ref = layer_refs[2 * li]        # (k*k, growth, cur_c)
            b_ref = layer_refs[2 * li + 1]    # (growth, 1) f32

            def tap_dot(kh, kw, _dil=dil, _cur=cur_c, _w=w_ref):
                dh = (kh - center) * _dil
                dw = (kw - center) * _dil
                off = dh * W + dw
                # Rows/cols falling outside the image vertically read zeros
                # from the halo; horizontal wrap is masked post-dot.
                slab = res_ref[0:_cur, PF + off:PF + off + HW]
                return jnp.dot(_w[kh * ksize + kw], slab,
                               preferred_element_type=jnp.float32)

            # Accumulate the k*k tap matmuls directly (no concat / wide-K
            # slab).  Taps sharing a horizontal shift are summed first so each
            # mask is applied exactly once per layer column.
            y = None
            for kw in range(ksize):
                dwv = (kw - center) * dil
                t = None
                for kh in range(ksize):
                    p = tap_dot(kh, kw)
                    t = p if t is None else t + p
                if dwv != 0:
                    t = t * shift_mask[dwv]
                y = t if y is None else y + t

            y = jnp.maximum(y + b_ref[...], 0.0)
            # TODO(synk): Dropout2d(p=0.2) is identity in eval mode; training
            # mode would need pltpu.prng_random_bits-based channel masking.
            res_ref[cur_c:cur_c + growth, PF:PF + HW] = y.astype(res_dtype)

        # ---- final 1x1 conv over the full concatenated channel stack --------
        feats = res_ref[0:C_total, PF:PF + HW]
        out = jnp.dot(w_last_ref[...], feats, preferred_element_type=jnp.float32)
        out = out + b_last_ref[...]
        o_ref[0] = out.astype(o_ref.dtype)

    return kernel


def msd_forward_pallas(x_nchw, layers, w_last, b_last, ksize=3,
                       res_dtype=jnp.float32):
    """Fused MS-D forward.  x_nchw: (N, Cin, H, W) float32.

    res_dtype=jnp.bfloat16 halves the resident VMEM footprint (preferred on
    v7x's 64 MiB/TC, also feeds v6e's bf16 MXU natively); accumulation, bias,
    ReLU and masks stay in float32.
    """
    assert ksize % 2 == 1, "only odd kernel sizes supported"
    N, Cin, H, W = x_nchw.shape
    HW = H * W
    center = (ksize - 1) // 2
    num_layers = len(layers)
    growth = layers[0][0].shape[-1]
    C_total = Cin + num_layers * growth
    d_max = max(d for (_, _, d) in layers)
    PF = _round_up(max(1, center * d_max * (W + 1)), 128)   # lane-aligned halo

    itemsize = np.dtype(res_dtype).itemsize
    res_bytes = C_total * (HW + 2 * PF) * itemsize
    if res_bytes > 48 * 1024 * 1024:
        # TODO(synk): spatial-tile grid axis with halo exchange for images
        # whose resident feature map exceeds ~48 MiB per TensorCore (v7x).
        raise NotImplementedError(
            "resident MS-D feature map (%d bytes) exceeds the per-core VMEM "
            "budget; spatial tiling not implemented" % res_bytes)

    # Pack per-layer weights as (k*k, growth, cur_c): one (growth, cur_c) MXU
    # operand per tap.  No channel padding: slabs read exactly [0:cur_c).
    layer_cfgs = []
    packed = []
    wt_bytes = 0
    cur = Cin
    for (w, b, dil) in layers:
        g = w.shape[-1]
        wt = jnp.transpose(w, (0, 1, 3, 2)).reshape(ksize * ksize, g, cur)
        wt = wt.astype(res_dtype)
        b2 = b.reshape(g, 1).astype(jnp.float32)
        packed.append((wt, b2))
        layer_cfgs.append((int(dil), cur, g))
        wt_bytes += wt.size * wt.dtype.itemsize + b2.size * 4
        cur += g

    Cout = w_last.shape[-1]
    wl = jnp.transpose(w_last[0, 0], (1, 0)).astype(res_dtype)   # (Cout, C_total)
    bl = b_last.reshape(Cout, 1).astype(jnp.float32)
    wt_bytes += wl.size * wl.dtype.itemsize + bl.size * 4

    x_flat = x_nchw.reshape(N, Cin, HW)

    kernel = _make_fused_msd_kernel(layer_cfgs, ksize, H, W, PF, C_total,
                                    res_dtype)

    in_specs = [pl.BlockSpec((1, Cin, HW), lambda n: (n, 0, 0))]
    args = [x_flat]
    for (wt, b2) in packed:
        in_specs.append(pl.BlockSpec(wt.shape, lambda n: (0, 0, 0)))
        in_specs.append(pl.BlockSpec(b2.shape, lambda n: (0, 0)))
        args.append(wt)
        args.append(b2)
    in_specs.append(pl.BlockSpec(wl.shape, lambda n: (0, 0)))
    in_specs.append(pl.BlockSpec(bl.shape, lambda n: (0, 0)))
    args.append(wl)
    args.append(bl)

    # Explicit scoped-VMEM budget: resident scratch + double-buffered I/O
    # blocks + weights + headroom (defaults are far below physical VMEM).
    io_bytes = (Cin * HW + Cout * HW) * x_nchw.dtype.itemsize
    vmem_limit = int(res_bytes + 2 * (io_bytes + wt_bytes) + (16 << 20))
    vmem_limit = min(vmem_limit, 100 << 20)

    out = pl.pallas_call(
        kernel,
        out_shape=jax.ShapeDtypeStruct((N, Cout, HW), x_nchw.dtype),
        grid=(N,),
        in_specs=in_specs,
        out_specs=pl.BlockSpec((1, Cout, HW), lambda n: (n, 0, 0)),
        scratch_shapes=[pltpu.VMEM((C_total, PF + HW + PF), res_dtype)],
        compiler_params=pltpu.CompilerParams(
            # Batch axis is "parallel" (megacore on v7x; each step is fully
            # self-contained: halos re-zeroed, data rows written before read).
            dimension_semantics=("parallel",),
            vmem_limit_bytes=vmem_limit),
    )(*args)

    return out.reshape(N, Cout, H, W)


class MSDropPallas:
    """JAX/Pallas port of models/MS_D.py::MSDrop (inference semantics)."""

    def __init__(self, in_channels, out_channels, num_layers, growth_rate,
                 ignore_class=-100, kernel_size=3, key=None,
                 res_dtype=jnp.float32):
        if key is None:
            key = jax.random.PRNGKey(0)
        self.in_channels = in_channels
        self.out_channels = out_channels
        self.num_layers = num_layers
        self.ignore_class = ignore_class
        self.kernel_size = kernel_size
        self.res_dtype = res_dtype

        # Same init scale as the PyTorch module.
        n = (kernel_size * kernel_size *
             (in_channels + growth_rate * (num_layers - 1)) + out_channels)
        std = math.sqrt(2.0 / n)

        keys = jax.random.split(key, num_layers + 1)
        self.layers = []
        current = in_channels
        for i in range(num_layers):
            dilation = (i + 1) % 10 + 1
            w = std * jax.random.normal(
                keys[i], (kernel_size, kernel_size, current, growth_rate),
                jnp.float32)
            b = jnp.zeros((growth_rate,), jnp.float32)
            self.layers.append((w, b, dilation))
            current += growth_rate

        self.w_last = std * jax.random.normal(
            keys[-1], (1, 1, current, out_channels), jnp.float32)
        self.b_last = jnp.zeros((out_channels,), jnp.float32)

    def __call__(self, x_nchw, res_dtype=None):
        rd = self.res_dtype if res_dtype is None else res_dtype
        res = msd_forward_pallas(x_nchw, self.layers, self.w_last, self.b_last,
                                 ksize=self.kernel_size, res_dtype=rd)
        if self.ignore_class > -1:
            s = (res.shape[0], 1, res.shape[2], res.shape[3])
            res = jnp.concatenate(
                [res[:, :self.ignore_class], jnp.zeros(s, res.dtype),
                 res[:, self.ignore_class:]], axis=1)
        return res


def _reference_forward(model, x_nchw):
    """Pure-JAX reference using lax.conv_general_dilated (full f32 precision)."""
    res = x_nchw
    for (w, b, dilation) in model.layers:
        ksize = w.shape[0]
        pad = ((ksize - 1) * dilation + 1) // 2
        y = jax.lax.conv_general_dilated(
            res, w, window_strides=(1, 1),
            padding=((pad, pad), (pad, pad)),
            rhs_dilation=(dilation, dilation),
            dimension_numbers=("NCHW", "HWIO", "NCHW"),
            precision=lax.Precision.HIGHEST)
        y = jnp.maximum(y + b[None, :, None, None], 0.0)
        res = jnp.concatenate([res, y], axis=1)
    res = jax.lax.conv_general_dilated(
        res, model.w_last, window_strides=(1, 1), padding=((0, 0), (0, 0)),
        dimension_numbers=("NCHW", "HWIO", "NCHW"),
        precision=lax.Precision.HIGHEST)
    res = res + model.b_last[None, :, None, None]
    return res


if __name__ == "__main__":
    # Small, module-consistent shapes.
    batch, in_channels, spatial = 2, 4, 16
    out_channels, num_layers, growth_rate = 5, 3, 4

    key = jax.random.PRNGKey(0)
    kx, kp = jax.random.split(key)
    x = jax.random.normal(kx, (batch, in_channels, spatial, spatial), jnp.float32)

    model = MSDropPallas(in_channels, out_channels, num_layers, growth_rate, key=kp)

    ref = jax.block_until_ready(_reference_forward(model, x))

    # f32 residency.  Tolerance is bounded by the MXU's default f32 matmul
    # precision (operands rounded to bf16 per pass, ~1e-3 relative per stage,
    # compounded over 4 matmul stages) -- not by kernel accuracy; real bugs
    # produce O(1) errors.
    out_f32 = jax.block_until_ready(model(x))
    assert out_f32.shape == (batch, out_channels, spatial, spatial), out_f32.shape
    err_f32 = float(jnp.max(jnp.abs(out_f32 - ref)))
    assert jnp.allclose(out_f32, ref, atol=2e-2, rtol=2e-2), err_f32

    # bf16 residency (halved resident VMEM; preferred mode on v6e/v7x).
    # Looser tolerance accounts for bf16 storage of activations and weights.
    out_bf16 = jax.block_until_ready(model(x, res_dtype=jnp.bfloat16))
    err_bf16 = float(jnp.max(jnp.abs(out_bf16 - ref)))
    assert jnp.allclose(out_bf16, ref, atol=1e-1, rtol=1e-1), err_bf16

    print("KERNEL_OK")
</pallas_src>

<mosaic_0001>
module attributes {stable_mosaic.version = 11 : i64} {
  func.func @kernel(%arg0: i32, %arg1: memref<1x4x256xf32, #tpu.memory_space<vmem>>, %arg2: memref<9x4x4xf32, #tpu.memory_space<vmem>>, %arg3: memref<4x1xf32, #tpu.memory_space<vmem>>, %arg4: memref<9x4x8xf32, #tpu.memory_space<vmem>>, %arg5: memref<4x1xf32, #tpu.memory_space<vmem>>, %arg6: memref<9x4x12xf32, #tpu.memory_space<vmem>>, %arg7: memref<4x1xf32, #tpu.memory_space<vmem>>, %arg8: memref<5x16xf32, #tpu.memory_space<vmem>>, %arg9: memref<5x1xf32, #tpu.memory_space<vmem>>, %arg10: memref<1x5x256xf32, #tpu.memory_space<vmem>>, %arg11: memref<16x512xf32, #tpu.memory_space<vmem>>) attributes {dimension_semantics = [#tpu.dimension_semantics<parallel>], iteration_bounds = array<i64: 2>, scalar_prefetch = 0 : i64, scratch_operands = 1 : i64, tpu.core_type = #tpu.core_type<tc>, window_params = [{transform_indices = @transform_0, window_bounds = array<i64: 1, 4, 256>}, {pipeline_mode = #tpu.pipeline_mode<synchronous>, transform_indices = @transform_1, window_bounds = array<i64: 9, 4, 4>}, {pipeline_mode = #tpu.pipeline_mode<synchronous>, transform_indices = @transform_2, window_bounds = array<i64: 4, 1>}, {pipeline_mode = #tpu.pipeline_mode<synchronous>, transform_indices = @transform_3, window_bounds = array<i64: 9, 4, 8>}, {pipeline_mode = #tpu.pipeline_mode<synchronous>, transform_indices = @transform_4, window_bounds = array<i64: 4, 1>}, {pipeline_mode = #tpu.pipeline_mode<synchronous>, transform_indices = @transform_5, window_bounds = array<i64: 9, 4, 12>}, {pipeline_mode = #tpu.pipeline_mode<synchronous>, transform_indices = @transform_6, window_bounds = array<i64: 4, 1>}, {pipeline_mode = #tpu.pipeline_mode<synchronous>, transform_indices = @transform_7, window_bounds = array<i64: 5, 16>}, {pipeline_mode = #tpu.pipeline_mode<synchronous>, transform_indices = @transform_8, window_bounds = array<i64: 5, 1>}, {transform_indices = @transform_9, window_bounds = array<i64: 1, 5, 256>}]} {
    %cst = arith.constant 0.000000e+00 : f32
    %0 = vector.broadcast %cst : f32 to vector<16x128xf32>
    %c0 = arith.constant 0 : index
    %c0_0 = arith.constant 0 : index
    %1 = vector.load %arg11[%c0, %c0_0] : memref<16x512xf32, #tpu.memory_space<vmem>>, vector<16x128xf32>
    tpu.vector_store %arg11[%c0, %c0_0], %0 {strides = array<i32>} : memref<16x512xf32, #tpu.memory_space<vmem>>, vector<16x128xf32>,
    %cst_1 = arith.constant 0.000000e+00 : f32
    %2 = vector.broadcast %cst_1 : f32 to vector<16x128xf32>
    %c0_2 = arith.constant 0 : index
    %c384 = arith.constant 384 : index
    %3 = vector.load %arg11[%c0_2, %c384] : memref<16x512xf32, #tpu.memory_space<vmem>>, vector<16x128xf32>
    tpu.vector_store %arg11[%c0_2, %c384], %2 {strides = array<i32>} : memref<16x512xf32, #tpu.memory_space<vmem>>, vector<16x128xf32>,
    %c0_3 = arith.constant 0 : index
    %c0_4 = arith.constant 0 : index
    %c0_5 = arith.constant 0 : index
    %4 = vector.load %arg1[%c0_3, %c0_4, %c0_5] : memref<1x4x256xf32, #tpu.memory_space<vmem>>, vector<1x4x256xf32>
    %5 = vector.shape_cast %4 : vector<1x4x256xf32> to vector<4x256xf32>
    %c0_6 = arith.constant 0 : index
    %c128 = arith.constant 128 : index
    %6 = vector.load %arg11[%c0_6, %c128] : memref<16x512xf32, #tpu.memory_space<vmem>>, vector<4x256xf32>
    tpu.vector_store %arg11[%c0_6, %c128], %5 {strides = array<i32>} : memref<16x512xf32, #tpu.memory_space<vmem>>, vector<4x256xf32>,
    %7 = tpu.iota {dimensions = array<i32: 1>} : vector<1x256xi32>
    %c16_i32 = arith.constant 16 : i32
    %c0_i32 = arith.constant 0 : i32
    %8 = arith.cmpi eq, %c16_i32, %c0_i32 : i32
    %c1_i32 = arith.constant 1 : i32
    %9 = arith.select %8, %c1_i32, %c16_i32 : i32
    %10 = vector.broadcast %9 : i32 to vector<1x256xi32>
    %11 = arith.remsi %7, %10 : vector<1x256xi32>
    %c0_i32_7 = arith.constant 0 : i32
    %12 = vector.broadcast %c0_i32_7 : i32 to vector<1x256xi32>
    %13 = arith.cmpi ne, %11, %12 : vector<1x256xi32>
    %c0_i32_8 = arith.constant 0 : i32
    %14 = vector.broadcast %c0_i32_8 : i32 to vector<1x256xi32>
    %15 = arith.cmpi slt, %11, %14 : vector<1x256xi32>
    %c0_i32_9 = arith.constant 0 : i32
    %16 = arith.cmpi slt, %9, %c0_i32_9 : i32
    %17 = vector.broadcast %16 : i1 to vector<1x256xi1>
    %18 = vector.broadcast %17 : vector<1x256xi1> to vector<1x256xi1>
    %19 = arith.xori %15, %18 : vector<1x256xi1>
    %20 = arith.andi %19, %13 : vector<1x256xi1>
    %21 = vector.broadcast %9 : i32 to vector<1x256xi32>
    %22 = arith.addi %11, %21 : vector<1x256xi32>
    %23 = arith.select %20, %22, %11 : vector<1x256xi1>, vector<1x256xi32>
    %c4_i32 = arith.constant 4 : i32
    %24 = vector.broadcast %c4_i32 : i32 to vector<1x256xi32>
    %25 = arith.cmpi sge, %23, %24 : vector<1x256xi32>
    %26 = arith.extui %25 : vector<1x256xi1> to vector<1x256xi32>
    %27 = arith.sitofp %26 : vector<1x256xi32> to vector<1x256xf32>
    %c3_i32 = arith.constant 3 : i32
    %28 = vector.broadcast %c3_i32 : i32 to vector<1x256xi32>
    %29 = arith.cmpi sge, %23, %28 : vector<1x256xi32>
    %30 = arith.extui %29 : vector<1x256xi1> to vector<1x256xi32>
    %31 = arith.sitofp %30 : vector<1x256xi32> to vector<1x256xf32>
    %c2_i32 = arith.constant 2 : i32
    %32 = vector.broadcast %c2_i32 : i32 to vector<1x256xi32>
    %33 = arith.cmpi sge, %23, %32 : vector<1x256xi32>
    %34 = arith.extui %33 : vector<1x256xi1> to vector<1x256xi32>
    %35 = arith.sitofp %34 : vector<1x256xi32> to vector<1x256xf32>
    %c14_i32 = arith.constant 14 : i32
    %36 = vector.broadcast %c14_i32 : i32 to vector<1x256xi32>
    %37 = arith.cmpi slt, %23, %36 : vector<1x256xi32>
    %38 = arith.extui %37 : vector<1x256xi1> to vector<1x256xi32>
    %39 = arith.sitofp %38 : vector<1x256xi32> to vector<1x256xf32>
    %c13_i32 = arith.constant 13 : i32
    %40 = vector.broadcast %c13_i32 : i32 to vector<1x256xi32>
    %41 = arith.cmpi slt, %23, %40 : vector<1x256xi32>
    %42 = arith.extui %41 : vector<1x256xi1> to vector<1x256xi32>
    %43 = arith.sitofp %42 : vector<1x256xi32> to vector<1x256xf32>
    %c12_i32 = arith.constant 12 : i32
    %44 = vector.broadcast %c12_i32 : i32 to vector<1x256xi32>
    %45 = arith.cmpi slt, %23, %44 : vector<1x256xi32>
    %46 = arith.extui %45 : vector<1x256xi1> to vector<1x256xi32>
    %47 = arith.sitofp %46 : vector<1x256xi32> to vector<1x256xf32>
    %c0_10 = arith.constant 0 : index
    %c94 = arith.constant 94 : index
    %48 = vector.load %arg11[%c0_10, %c94] : memref<16x512xf32, #tpu.memory_space<vmem>>, vector<4x256xf32>
    %c0_11 = arith.constant 0 : index
    %c0_12 = arith.constant 0 : index
    %c0_13 = arith.constant 0 : index
    %49 = vector.load %arg2[%c0_11, %c0_12, %c0_13] : memref<9x4x4xf32, #tpu.memory_space<vmem>>, vector<1x4x4xf32>
    %50 = vector.shape_cast %49 : vector<1x4x4xf32> to vector<4x4xf32>
    %cst_14 = arith.constant dense<0.000000e+00> : vector<4x256xf32>
    %51 = tpu.matmul %50, %48, %cst_14 {dimension_numbers = #tpu.dot_dimension_numbers<[1], [0], [0], [1], [0, 0, 1, 1], [], []>} : vector<4x4xf32>, vector<4x256xf32>, vector<4x256xf32> -> vector<4x256xf32>
    %c0_15 = arith.constant 0 : index
    %c126 = arith.constant 126 : index
    %52 = vector.load %arg11[%c0_15, %c126] : memref<16x512xf32, #tpu.memory_space<vmem>>, vector<4x256xf32>
    %c3 = arith.constant 3 : index
    %c0_16 = arith.constant 0 : index
    %c0_17 = arith.constant 0 : index
    %53 = vector.load %arg2[%c3, %c0_16, %c0_17] : memref<9x4x4xf32, #tpu.memory_space<vmem>>, vector<1x4x4xf32>
    %54 = vector.shape_cast %53 : vector<1x4x4xf32> to vector<4x4xf32>
    %cst_18 = arith.constant dense<0.000000e+00> : vector<4x256xf32>
    %55 = tpu.matmul %54, %52, %cst_18 {dimension_numbers = #tpu.dot_dimension_numbers<[1], [0], [0], [1], [0, 0, 1, 1], [], []>} : vector<4x4xf32>, vector<4x256xf32>, vector<4x256xf32> -> vector<4x256xf32>
    %56 = arith.addf %51, %55 : vector<4x256xf32>
    %c0_19 = arith.constant 0 : index
    %c158 = arith.constant 158 : index
    %57 = vector.load %arg11[%c0_19, %c158] : memref<16x512xf32, #tpu.memory_space<vmem>>, vector<4x256xf32>
    %c6 = arith.constant 6 : index
    %c0_20 = arith.constant 0 : index
    %c0_21 = arith.constant 0 : index
    %58 = vector.load %arg2[%c6, %c0_20, %c0_21] : memref<9x4x4xf32, #tpu.memory_space<vmem>>, vector<1x4x4xf32>
    %59 = vector.shape_cast %58 : vector<1x4x4xf32> to vector<4x4xf32>
    %cst_22 = arith.constant dense<0.000000e+00> : vector<4x256xf32>
    %60 = tpu.matmul %59, %57, %cst_22 {dimension_numbers = #tpu.dot_dimension_numbers<[1], [0], [0], [1], [0, 0, 1, 1], [], []>} : vector<4x4xf32>, vector<4x256xf32>, vector<4x256xf32> -> vector<4x256xf32>
    %61 = arith.addf %56, %60 : vector<4x256xf32>
    %62 = vector.broadcast %35 : vector<1x256xf32> to vector<4x256xf32>
    %63 = arith.mulf %61, %62 : vector<4x256xf32>
    %c0_23 = arith.constant 0 : index
    %c96 = arith.constant 96 : index
    %64 = vector.load %arg11[%c0_23, %c96] : memref<16x512xf32, #tpu.memory_space<vmem>>, vector<4x256xf32>
    %c1 = arith.constant 1 : index
    %c0_24 = arith.constant 0 : index
    %c0_25 = arith.constant 0 : index
    %65 = vector.load %arg2[%c1, %c0_24, %c0_25] : memref<9x4x4xf32, #tpu.memory_space<vmem>>, vector<1x4x4xf32>
    %66 = vector.shape_cast %65 : vector<1x4x4xf32> to vector<4x4xf32>
    %cst_26 = arith.constant dense<0.000000e+00> : vector<4x256xf32>
    %67 = tpu.matmul %66, %64, %cst_26 {dimension_numbers = #tpu.dot_dimension_numbers<[1], [0], [0], [1], [0, 0, 1, 1], [], []>} : vector<4x4xf32>, vector<4x256xf32>, vector<4x256xf32> -> vector<4x256xf32>
    %c0_27 = arith.constant 0 : index
    %c128_28 = arith.constant 128 : index
    %68 = vector.load %arg11[%c0_27, %c128_28] : memref<16x512xf32, #tpu.memory_space<vmem>>, vector<4x256xf32>
    %c4 = arith.constant 4 : index
    %c0_29 = arith.constant 0 : index
    %c0_30 = arith.constant 0 : index
    %69 = vector.load %arg2[%c4, %c0_29, %c0_30] : memref<9x4x4xf32, #tpu.memory_space<vmem>>, vector<1x4x4xf32>
    %70 = vector.shape_cast %69 : vector<1x4x4xf32> to vector<4x4xf32>
    %cst_31 = arith.constant dense<0.000000e+00> : vector<4x256xf32>
    %71 = tpu.matmul %70, %68, %cst_31 {dimension_numbers = #tpu.dot_dimension_numbers<[1], [0], [0], [1], [0, 0, 1, 1], [], []>} : vector<4x4xf32>, vector<4x256xf32>, vector<4x256xf32> -> vector<4x256xf32>
    %72 = arith.addf %67, %71 : vector<4x256xf32>
    %c0_32 = arith.constant 0 : index
    %c160 = arith.constant 160 : index
    %73 = vector.load %arg11[%c0_32, %c160] : memref<16x512xf32, #tpu.memory_space<vmem>>, vector<4x256xf32>
    %c7 = arith.constant 7 : index
    %c0_33 = arith.constant 0 : index
    %c0_34 = arith.constant 0 : index
    %74 = vector.load %arg2[%c7, %c0_33, %c0_34] : memref<9x4x4xf32, #tpu.memory_space<vmem>>, vector<1x4x4xf32>
    %75 = vector.shape_cast %74 : vector<1x4x4xf32> to vector<4x4xf32>
    %cst_35 = arith.constant dense<0.000000e+00> : vector<4x256xf32>
    %76 = tpu.matmul %75, %73, %cst_35 {dimension_numbers = #tpu.dot_dimension_numbers<[1], [0], [0], [1], [0, 0, 1, 1], [], []>} : vector<4x4xf32>, vector<4x256xf32>, vector<4x256xf32> -> vector<4x256xf32>
    %77 = arith.addf %72, %76 : vector<4x256xf32>
    %78 = arith.addf %63, %77 : vector<4x256xf32>
    %c0_36 = arith.constant 0 : index
    %c98 = arith.constant 98 : index
    %79 = vector.load %arg11[%c0_36, %c98] : memref<16x512xf32, #tpu.memory_space<vmem>>, vector<4x256xf32>
    %c2 = arith.constant 2 : index
    %c0_37 = arith.constant 0 : index
    %c0_38 = arith.constant 0 : index
    %80 = vector.load %arg2[%c2, %c0_37, %c0_38] : memref<9x4x4xf32, #tpu.memory_space<vmem>>, vector<1x4x4xf32>
    %81 = vector.shape_cast %80 : vector<1x4x4xf32> to vector<4x4xf32>
    %cst_39 = arith.constant dense<0.000000e+00> : vector<4x256xf32>
    %82 = tpu.matmul %81, %79, %cst_39 {dimension_numbers = #tpu.dot_dimension_numbers<[1], [0], [0], [1], [0, 0, 1, 1], [], []>} : vector<4x4xf32>, vector<4x256xf32>, vector<4x256xf32> -> vector<4x256xf32>
    %c0_40 = arith.constant 0 : index
    %c130 = arith.constant 130 : index
    %83 = vector.load %arg11[%c0_40, %c130] : memref<16x512xf32, #tpu.memory_space<vmem>>, vector<4x256xf32>
    %c5 = arith.constant 5 : index
    %c0_41 = arith.constant 0 : index
    %c0_42 = arith.constant 0 : index
    %84 = vector.load %arg2[%c5, %c0_41, %c0_42] : memref<9x4x4xf32, #tpu.memory_space<vmem>>, vector<1x4x4xf32>
    %85 = vector.shape_cast %84 : vector<1x4x4xf32> to vector<4x4xf32>
    %cst_43 = arith.constant dense<0.000000e+00> : vector<4x256xf32>
    %86 = tpu.matmul %85, %83, %cst_43 {dimension_numbers = #tpu.dot_dimension_numbers<[1], [0], [0], [1], [0, 0, 1, 1], [], []>} : vector<4x4xf32>, vector<4x256xf32>, vector<4x256xf32> -> vector<4x256xf32>
    %87 = arith.addf %82, %86 : vector<4x256xf32>
    %c0_44 = arith.constant 0 : index
    %c162 = arith.constant 162 : index
    %88 = vector.load %arg11[%c0_44, %c162] : memref<16x512xf32, #tpu.memory_space<vmem>>, vector<4x256xf32>
    %c8 = arith.constant 8 : index
    %c0_45 = arith.constant 0 : index
    %c0_46 = arith.constant 0 : index
    %89 = vector.load %arg2[%c8, %c0_45, %c0_46] : memref<9x4x4xf32, #tpu.memory_space<vmem>>, vector<1x4x4xf32>
    %90 = vector.shape_cast %89 : vector<1x4x4xf32> to vector<4x4xf32>
    %cst_47 = arith.constant dense<0.000000e+00> : vector<4x256xf32>
    %91 = tpu.matmul %90, %88, %cst_47 {dimension_numbers = #tpu.dot_dimension_numbers<[1], [0], [0], [1], [0, 0, 1, 1], [], []>} : vector<4x4xf32>, vector<4x256xf32>, vector<4x256xf32> -> vector<4x256xf32>
    %92 = arith.addf %87, %91 : vector<4x256xf32>
    %93 = vector.broadcast %39 : vector<1x256xf32> to vector<4x256xf32>
    %94 = arith.mulf %92, %93 : vector<4x256xf32>
    %95 = arith.addf %78, %94 : vector<4x256xf32>
    %c0_48 = arith.constant 0 : index
    %c0_49 = arith.constant 0 : index
    %96 = vector.load %arg3[%c0_48, %c0_49] : memref<4x1xf32, #tpu.memory_space<vmem>>, vector<4x1xf32>
    %97 = vector.broadcast %96 : vector<4x1xf32> to vector<4x256xf32>
    %98 = arith.addf %95, %97 : vector<4x256xf32>
    %cst_50 = arith.constant 0.000000e+00 : f32
    %99 = vector.broadcast %cst_50 : f32 to vector<4x256xf32>
    %100 = arith.maximumf %98, %99 : vector<4x256xf32>
    %c4_51 = arith.constant 4 : index
    %c128_52 = arith.constant 128 : index
    %101 = vector.load %arg11[%c4_51, %c128_52] : memref<16x512xf32, #tpu.memory_space<vmem>>, vector<4x256xf32>
    tpu.vector_store %arg11[%c4_51, %c128_52], %100 {strides = array<i32>} : memref<16x512xf32, #tpu.memory_space<vmem>>, vector<4x256xf32>,
    %c0_53 = arith.constant 0 : index
    %c77 = arith.constant 77 : index
    %102 = vector.load %arg11[%c0_53, %c77] : memref<16x512xf32, #tpu.memory_space<vmem>>, vector<8x256xf32>
    %c0_54 = arith.constant 0 : index
    %c0_55 = arith.constant 0 : index
    %c0_56 = arith.constant 0 : index
    %103 = vector.load %arg4[%c0_54, %c0_55, %c0_56] : memref<9x4x8xf32, #tpu.memory_space<vmem>>, vector<1x4x8xf32>
    %104 = vector.shape_cast %103 : vector<1x4x8xf32> to vector<4x8xf32>
    %cst_57 = arith.constant dense<0.000000e+00> : vector<4x256xf32>
    %105 = tpu.matmul %104, %102, %cst_57 {dimension_numbers = #tpu.dot_dimension_numbers<[1], [0], [0], [1], [0, 0, 1, 1], [], []>} : vector<4x8xf32>, vector<8x256xf32>, vector<4x256xf32> -> vector<4x256xf32>
    %c0_58 = arith.constant 0 : index
    %c125 = arith.constant 125 : index
    %106 = vector.load %arg11[%c0_58, %c125] : memref<16x512xf32, #tpu.memory_space<vmem>>, vector<8x256xf32>
    %c3_59 = arith.constant 3 : index
    %c0_60 = arith.constant 0 : index
    %c0_61 = arith.constant 0 : index
    %107 = vector.load %arg4[%c3_59, %c0_60, %c0_61] : memref<9x4x8xf32, #tpu.memory_space<vmem>>, vector<1x4x8xf32>
    %108 = vector.shape_cast %107 : vector<1x4x8xf32> to vector<4x8xf32>
    %cst_62 = arith.constant dense<0.000000e+00> : vector<4x256xf32>
    %109 = tpu.matmul %108, %106, %cst_62 {dimension_numbers = #tpu.dot_dimension_numbers<[1], [0], [0], [1], [0, 0, 1, 1], [], []>} : vector<4x8xf32>, vector<8x256xf32>, vector<4x256xf32> -> vector<4x256xf32>
    %110 = arith.addf %105, %109 : vector<4x256xf32>
    %c0_63 = arith.constant 0 : index
    %c173 = arith.constant 173 : index
    %111 = vector.load %arg11[%c0_63, %c173] : memref<16x512xf32, #tpu.memory_space<vmem>>, vector<8x256xf32>
    %c6_64 = arith.constant 6 : index
    %c0_65 = arith.constant 0 : index
    %c0_66 = arith.constant 0 : index
    %112 = vector.load %arg4[%c6_64, %c0_65, %c0_66] : memref<9x4x8xf32, #tpu.memory_space<vmem>>, vector<1x4x8xf32>
    %113 = vector.shape_cast %112 : vector<1x4x8xf32> to vector<4x8xf32>
    %cst_67 = arith.constant dense<0.000000e+00> : vector<4x256xf32>
    %114 = tpu.matmul %113, %111, %cst_67 {dimension_numbers = #tpu.dot_dimension_numbers<[1], [0], [0], [1], [0, 0, 1, 1], [], []>} : vector<4x8xf32>, vector<8x256xf32>, vector<4x256xf32> -> vector<4x256xf32>
    %115 = arith.addf %110, %114 : vector<4x256xf32>
    %116 = vector.broadcast %31 : vector<1x256xf32> to vector<4x256xf32>
    %117 = arith.mulf %115, %116 : vector<4x256xf32>
    %c0_68 = arith.constant 0 : index
    %c80 = arith.constant 80 : index
    %118 = vector.load %arg11[%c0_68, %c80] : memref<16x512xf32, #tpu.memory_space<vmem>>, vector<8x256xf32>
    %c1_69 = arith.constant 1 : index
    %c0_70 = arith.constant 0 : index
    %c0_71 = arith.constant 0 : index
    %119 = vector.load %arg4[%c1_69, %c0_70, %c0_71] : memref<9x4x8xf32, #tpu.memory_space<vmem>>, vector<1x4x8xf32>
    %120 = vector.shape_cast %119 : vector<1x4x8xf32> to vector<4x8xf32>
    %cst_72 = arith.constant dense<0.000000e+00> : vector<4x256xf32>
    %121 = tpu.matmul %120, %118, %cst_72 {dimension_numbers = #tpu.dot_dimension_numbers<[1], [0], [0], [1], [0, 0, 1, 1], [], []>} : vector<4x8xf32>, vector<8x256xf32>, vector<4x256xf32> -> vector<4x256xf32>
    %c0_73 = arith.constant 0 : index
    %c128_74 = arith.constant 128 : index
    %122 = vector.load %arg11[%c0_73, %c128_74] : memref<16x512xf32, #tpu.memory_space<vmem>>, vector<8x256xf32>
    %c4_75 = arith.constant 4 : index
    %c0_76 = arith.constant 0 : index
    %c0_77 = arith.constant 0 : index
    %123 = vector.load %arg4[%c4_75, %c0_76, %c0_77] : memref<9x4x8xf32, #tpu.memory_space<vmem>>, vector<1x4x8xf32>
    %124 = vector.shape_cast %123 : vector<1x4x8xf32> to vector<4x8xf32>
    %cst_78 = arith.constant dense<0.000000e+00> : vector<4x256xf32>
    %125 = tpu.matmul %124, %122, %cst_78 {dimension_numbers = #tpu.dot_dimension_numbers<[1], [0], [0], [1], [0, 0, 1, 1], [], []>} : vector<4x8xf32>, vector<8x256xf32>, vector<4x256xf32> -> vector<4x256xf32>
    %126 = arith.addf %121, %125 : vector<4x256xf32>
    %c0_79 = arith.constant 0 : index
    %c176 = arith.constant 176 : index
    %127 = vector.load %arg11[%c0_79, %c176] : memref<16x512xf32, #tpu.memory_space<vmem>>, vector<8x256xf32>
    %c7_80 = arith.constant 7 : index
    %c0_81 = arith.constant 0 : index
    %c0_82 = arith.constant 0 : index
    %128 = vector.load %arg4[%c7_80, %c0_81, %c0_82] : memref<9x4x8xf32, #tpu.memory_space<vmem>>, vector<1x4x8xf32>
    %129 = vector.shape_cast %128 : vector<1x4x8xf32> to vector<4x8xf32>
    %cst_83 = arith.constant dense<0.000000e+00> : vector<4x256xf32>
    %130 = tpu.matmul %129, %127, %cst_83 {dimension_numbers = #tpu.dot_dimension_numbers<[1], [0], [0], [1], [0, 0, 1, 1], [], []>} : vector<4x8xf32>, vector<8x256xf32>, vector<4x256xf32> -> vector<4x256xf32>
    %131 = arith.addf %126, %130 : vector<4x256xf32>
    %132 = arith.addf %117, %131 : vector<4x256xf32>
    %c0_84 = arith.constant 0 : index
    %c83 = arith.constant 83 : index
    %133 = vector.load %arg11[%c0_84, %c83] : memref<16x512xf32, #tpu.memory_space<vmem>>, vector<8x256xf32>
    %c2_85 = arith.constant 2 : index
    %c0_86 = arith.constant 0 : index
    %c0_87 = arith.constant 0 : index
    %134 = vector.load %arg4[%c2_85, %c0_86, %c0_87] : memref<9x4x8xf32, #tpu.memory_space<vmem>>, vector<1x4x8xf32>
    %135 = vector.shape_cast %134 : vector<1x4x8xf32> to vector<4x8xf32>
    %cst_88 = arith.constant dense<0.000000e+00> : vector<4x256xf32>
    %136 = tpu.matmul %135, %133, %cst_88 {dimension_numbers = #tpu.dot_dimension_numbers<[1], [0], [0], [1], [0, 0, 1, 1], [], []>} : vector<4x8xf32>, vector<8x256xf32>, vector<4x256xf32> -> vector<4x256xf32>
    %c0_89 = arith.constant 0 : index
    %c131 = arith.constant 131 : index
    %137 = vector.load %arg11[%c0_89, %c131] : memref<16x512xf32, #tpu.memory_space<vmem>>, vector<8x256xf32>
    %c5_90 = arith.constant 5 : index
    %c0_91 = arith.constant 0 : index
    %c0_92 = arith.constant 0 : index
    %138 = vector.load %arg4[%c5_90, %c0_91, %c0_92] : memref<9x4x8xf32, #tpu.memory_space<vmem>>, vector<1x4x8xf32>
    %139 = vector.shape_cast %138 : vector<1x4x8xf32> to vector<4x8xf32>
    %cst_93 = arith.constant dense<0.000000e+00> : vector<4x256xf32>
    %140 = tpu.matmul %139, %137, %cst_93 {dimension_numbers = #tpu.dot_dimension_numbers<[1], [0], [0], [1], [0, 0, 1, 1], [], []>} : vector<4x8xf32>, vector<8x256xf32>, vector<4x256xf32> -> vector<4x256xf32>
    %141 = arith.addf %136, %140 : vector<4x256xf32>
    %c0_94 = arith.constant 0 : index
    %c179 = arith.constant 179 : index
    %142 = vector.load %arg11[%c0_94, %c179] : memref<16x512xf32, #tpu.memory_space<vmem>>, vector<8x256xf32>
    %c8_95 = arith.constant 8 : index
    %c0_96 = arith.constant 0 : index
    %c0_97 = arith.constant 0 : index
    %143 = vector.load %arg4[%c8_95, %c0_96, %c0_97] : memref<9x4x8xf32, #tpu.memory_space<vmem>>, vector<1x4x8xf32>
    %144 = vector.shape_cast %143 : vector<1x4x8xf32> to vector<4x8xf32>
    %cst_98 = arith.constant dense<0.000000e+00> : vector<4x256xf32>
    %145 = tpu.matmul %144, %142, %cst_98 {dimension_numbers = #tpu.dot_dimension_numbers<[1], [0], [0], [1], [0, 0, 1, 1], [], []>} : vector<4x8xf32>, vector<8x256xf32>, vector<4x256xf32> -> vector<4x256xf32>
    %146 = arith.addf %141, %145 : vector<4x256xf32>
    %147 = vector.broadcast %43 : vector<1x256xf32> to vector<4x256xf32>
    %148 = arith.mulf %146, %147 : vector<4x256xf32>
    %149 = arith.addf %132, %148 : vector<4x256xf32>
    %c0_99 = arith.constant 0 : index
    %c0_100 = arith.constant 0 : index
    %150 = vector.load %arg5[%c0_99, %c0_100] : memref<4x1xf32, #tpu.memory_space<vmem>>, vector<4x1xf32>
    %151 = vector.broadcast %150 : vector<4x1xf32> to vector<4x256xf32>
    %152 = arith.addf %149, %151 : vector<4x256xf32>
    %cst_101 = arith.constant 0.000000e+00 : f32
    %153 = vector.broadcast %cst_101 : f32 to vector<4x256xf32>
    %154 = arith.maximumf %152, %153 : vector<4x256xf32>
    %c8_102 = arith.constant 8 : index
    %c128_103 = arith.constant 128 : index
    %155 = vector.load %arg11[%c8_102, %c128_103] : memref<16x512xf32, #tpu.memory_space<vmem>>, vector<4x256xf32>
    tpu.vector_store %arg11[%c8_102, %c128_103], %154 {strides = array<i32>} : memref<16x512xf32, #tpu.memory_space<vmem>>, vector<4x256xf32>,
    %c0_104 = arith.constant 0 : index
    %c60 = arith.constant 60 : index
    %156 = vector.load %arg11[%c0_104, %c60] : memref<16x512xf32, #tpu.memory_space<vmem>>, vector<12x256xf32>
    %c0_105 = arith.constant 0 : index
    %c0_106 = arith.constant 0 : index
    %c0_107 = arith.constant 0 : index
    %157 = vector.load %arg6[%c0_105, %c0_106, %c0_107] : memref<9x4x12xf32, #tpu.memory_space<vmem>>, vector<1x4x12xf32>
    %158 = vector.shape_cast %157 : vector<1x4x12xf32> to vector<4x12xf32>
    %cst_108 = arith.constant dense<0.000000e+00> : vector<4x256xf32>
    %159 = tpu.matmul %158, %156, %cst_108 {dimension_numbers = #tpu.dot_dimension_numbers<[1], [0], [0], [1], [0, 0, 1, 1], [], []>} : vector<4x12xf32>, vector<12x256xf32>, vector<4x256xf32> -> vector<4x256xf32>
    %c0_109 = arith.constant 0 : index
    %c124 = arith.constant 124 : index
    %160 = vector.load %arg11[%c0_109, %c124] : memref<16x512xf32, #tpu.memory_space<vmem>>, vector<12x256xf32>
    %c3_110 = arith.constant 3 : index
    %c0_111 = arith.constant 0 : index
    %c0_112 = arith.constant 0 : index
    %161 = vector.load %arg6[%c3_110, %c0_111, %c0_112] : memref<9x4x12xf32, #tpu.memory_space<vmem>>, vector<1x4x12xf32>
    %162 = vector.shape_cast %161 : vector<1x4x12xf32> to vector<4x12xf32>
    %cst_113 = arith.constant dense<0.000000e+00> : vector<4x256xf32>
    %163 = tpu.matmul %162, %160, %cst_113 {dimension_numbers = #tpu.dot_dimension_numbers<[1], [0], [0], [1], [0, 0, 1, 1], [], []>} : vector<4x12xf32>, vector<12x256xf32>, vector<4x256xf32> -> vector<4x256xf32>
    %164 = arith.addf %159, %163 : vector<4x256xf32>
    %c0_114 = arith.constant 0 : index
    %c188 = arith.constant 188 : index
    %165 = vector.load %arg11[%c0_114, %c188] : memref<16x512xf32, #tpu.memory_space<vmem>>, vector<12x256xf32>
    %c6_115 = arith.constant 6 : index
    %c0_116 = arith.constant 0 : index
    %c0_117 = arith.constant 0 : index
    %166 = vector.load %arg6[%c6_115, %c0_116, %c0_117] : memref<9x4x12xf32, #tpu.memory_space<vmem>>, vector<1x4x12xf32>
    %167 = vector.shape_cast %166 : vector<1x4x12xf32> to vector<4x12xf32>
    %cst_118 = arith.constant dense<0.000000e+00> : vector<4x256xf32>
    %168 = tpu.matmul %167, %165, %cst_118 {dimension_numbers = #tpu.dot_dimension_numbers<[1], [0], [0], [1], [0, 0, 1, 1], [], []>} : vector<4x12xf32>, vector<12x256xf32>, vector<4x256xf32> -> vector<4x256xf32>
    %169 = arith.addf %164, %168 : vector<4x256xf32>
    %170 = vector.broadcast %27 : vector<1x256xf32> to vector<4x256xf32>
    %171 = arith.mulf %169, %170 : vector<4x256xf32>
    %c0_119 = arith.constant 0 : index
    %c64 = arith.constant 64 : index
    %172 = vector.load %arg11[%c0_119, %c64] : memref<16x512xf32, #tpu.memory_space<vmem>>, vector<12x256xf32>
    %c1_120 = arith.constant 1 : index
    %c0_121 = arith.constant 0 : index
    %c0_122 = arith.constant 0 : index
    %173 = vector.load %arg6[%c1_120, %c0_121, %c0_122] : memref<9x4x12xf32, #tpu.memory_space<vmem>>, vector<1x4x12xf32>
    %174 = vector.shape_cast %173 : vector<1x4x12xf32> to vector<4x12xf32>
    %cst_123 = arith.constant dense<0.000000e+00> : vector<4x256xf32>
    %175 = tpu.matmul %174, %172, %cst_123 {dimension_numbers = #tpu.dot_dimension_numbers<[1], [0], [0], [1], [0, 0, 1, 1], [], []>} : vector<4x12xf32>, vector<12x256xf32>, vector<4x256xf32> -> vector<4x256xf32>
    %c0_124 = arith.constant 0 : index
    %c128_125 = arith.constant 128 : index
    %176 = vector.load %arg11[%c0_124, %c128_125] : memref<16x512xf32, #tpu.memory_space<vmem>>, vector<12x256xf32>
    %c4_126 = arith.constant 4 : index
    %c0_127 = arith.constant 0 : index
    %c0_128 = arith.constant 0 : index
    %177 = vector.load %arg6[%c4_126, %c0_127, %c0_128] : memref<9x4x12xf32, #tpu.memory_space<vmem>>, vector<1x4x12xf32>
    %178 = vector.shape_cast %177 : vector<1x4x12xf32> to vector<4x12xf32>
    %cst_129 = arith.constant dense<0.000000e+00> : vector<4x256xf32>
    %179 = tpu.matmul %178, %176, %cst_129 {dimension_numbers = #tpu.dot_dimension_numbers<[1], [0], [0], [1], [0, 0, 1, 1], [], []>} : vector<4x12xf32>, vector<12x256xf32>, vector<4x256xf32> -> vector<4x256xf32>
    %180 = arith.addf %175, %179 : vector<4x256xf32>
    %c0_130 = arith.constant 0 : index
    %c192 = arith.constant 192 : index
    %181 = vector.load %arg11[%c0_130, %c192] : memref<16x512xf32, #tpu.memory_space<vmem>>, vector<12x256xf32>
    %c7_131 = arith.constant 7 : index
    %c0_132 = arith.constant 0 : index
    %c0_133 = arith.constant 0 : index
    %182 = vector.load %arg6[%c7_131, %c0_132, %c0_133] : memref<9x4x12xf32, #tpu.memory_space<vmem>>, vector<1x4x12xf32>
    %183 = vector.shape_cast %182 : vector<1x4x12xf32> to vector<4x12xf32>
    %cst_134 = arith.constant dense<0.000000e+00> : vector<4x256xf32>
    %184 = tpu.matmul %183, %181, %cst_134 {dimension_numbers = #tpu.dot_dimension_numbers<[1], [0], [0], [1], [0, 0, 1, 1], [], []>} : vector<4x12xf32>, vector<12x256xf32>, vector<4x256xf32> -> vector<4x256xf32>
    %185 = arith.addf %180, %184 : vector<4x256xf32>
    %186 = arith.addf %171, %185 : vector<4x256xf32>
    %c0_135 = arith.constant 0 : index
    %c68 = arith.constant 68 : index
    %187 = vector.load %arg11[%c0_135, %c68] : memref<16x512xf32, #tpu.memory_space<vmem>>, vector<12x256xf32>
    %c2_136 = arith.constant 2 : index
    %c0_137 = arith.constant 0 : index
    %c0_138 = arith.constant 0 : index
    %188 = vector.load %arg6[%c2_136, %c0_137, %c0_138] : memref<9x4x12xf32, #tpu.memory_space<vmem>>, vector<1x4x12xf32>
    %189 = vector.shape_cast %188 : vector<1x4x12xf32> to vector<4x12xf32>
    %cst_139 = arith.constant dense<0.000000e+00> : vector<4x256xf32>
    %190 = tpu.matmul %189, %187, %cst_139 {dimension_numbers = #tpu.dot_dimension_numbers<[1], [0], [0], [1], [0, 0, 1, 1], [], []>} : vector<4x12xf32>, vector<12x256xf32>, vector<4x256xf32> -> vector<4x256xf32>
    %c0_140 = arith.constant 0 : index
    %c132 = arith.constant 132 : index
    %191 = vector.load %arg11[%c0_140, %c132] : memref<16x512xf32, #tpu.memory_space<vmem>>, vector<12x256xf32>
    %c5_141 = arith.constant 5 : index
    %c0_142 = arith.constant 0 : index
    %c0_143 = arith.constant 0 : index
    %192 = vector.load %arg6[%c5_141, %c0_142, %c0_143] : memref<9x4x12xf32, #tpu.memory_space<vmem>>, vector<1x4x12xf32>
    %193 = vector.shape_cast %192 : vector<1x4x12xf32> to vector<4x12xf32>
    %cst_144 = arith.constant dense<0.000000e+00> : vector<4x256xf32>
    %194 = tpu.matmul %193, %191, %cst_144 {dimension_numbers = #tpu.dot_dimension_numbers<[1], [0], [0], [1], [0, 0, 1, 1], [], []>} : vector<4x12xf32>, vector<12x256xf32>, vector<4x256xf32> -> vector<4x256xf32>
    %195 = arith.addf %190, %194 : vector<4x256xf32>
    %c0_145 = arith.constant 0 : index
    %c196 = arith.constant 196 : index
    %196 = vector.load %arg11[%c0_145, %c196] : memref<16x512xf32, #tpu.memory_space<vmem>>, vector<12x256xf32>
    %c8_146 = arith.constant 8 : index
    %c0_147 = arith.constant 0 : index
    %c0_148 = arith.constant 0 : index
    %197 = vector.load %arg6[%c8_146, %c0_147, %c0_148] : memref<9x4x12xf32, #tpu.memory_space<vmem>>, vector<1x4x12xf32>
    %198 = vector.shape_cast %197 : vector<1x4x12xf32> to vector<4x12xf32>
    %cst_149 = arith.constant dense<0.000000e+00> : vector<4x256xf32>
    %199 = tpu.matmul %198, %196, %cst_149 {dimension_numbers = #tpu.dot_dimension_numbers<[1], [0], [0], [1], [0, 0, 1, 1], [], []>} : vector<4x12xf32>, vector<12x256xf32>, vector<4x256xf32> -> vector<4x256xf32>
    %200 = arith.addf %195, %199 : vector<4x256xf32>
    %201 = vector.broadcast %47 : vector<1x256xf32> to vector<4x256xf32>
    %202 = arith.mulf %200, %201 : vector<4x256xf32>
    %203 = arith.addf %186, %202 : vector<4x256xf32>
    %c0_150 = arith.constant 0 : index
    %c0_151 = arith.constant 0 : index
    %204 = vector.load %arg7[%c0_150, %c0_151] : memref<4x1xf32, #tpu.memory_space<vmem>>, vector<4x1xf32>
    %205 = vector.broadcast %204 : vector<4x1xf32> to vector<4x256xf32>
    %206 = arith.addf %203, %205 : vector<4x256xf32>
    %cst_152 = arith.constant 0.000000e+00 : f32
    %207 = vector.broadcast %cst_152 : f32 to vector<4x256xf32>
    %208 = arith.maximumf %206, %207 : vector<4x256xf32>
    %c12 = arith.constant 12 : index
    %c128_153 = arith.constant 128 : index
    %209 = vector.load %arg11[%c12, %c128_153] : memref<16x512xf32, #tpu.memory_space<vmem>>, vector<4x256xf32>
    tpu.vector_store %arg11[%c12, %c128_153], %208 {strides = array<i32>} : memref<16x512xf32, #tpu.memory_space<vmem>>, vector<4x256xf32>,
    %c0_154 = arith.constant 0 : index
    %c128_155 = arith.constant 128 : index
    %210 = vector.load %arg11[%c0_154, %c128_155] : memref<16x512xf32, #tpu.memory_space<vmem>>, vector<16x256xf32>
    %c0_156 = arith.constant 0 : index
    %c0_157 = arith.constant 0 : index
    %211 = vector.load %arg8[%c0_156, %c0_157] : memref<5x16xf32, #tpu.memory_space<vmem>>, vector<5x16xf32>
    %cst_158 = arith.constant dense<0.000000e+00> : vector<5x256xf32>
    %212 = tpu.matmul %211, %210, %cst_158 {dimension_numbers = #tpu.dot_dimension_numbers<[1], [0], [0], [1], [0, 0, 1, 1], [], []>} : vector<5x16xf32>, vector<16x256xf32>, vector<5x256xf32> -> vector<5x256xf32>
    %c0_159 = arith.constant 0 : index
    %c0_160 = arith.constant 0 : index
    %213 = vector.load %arg9[%c0_159, %c0_160] : memref<5x1xf32, #tpu.memory_space<vmem>>, vector<5x1xf32>
    %214 = vector.broadcast %213 : vector<5x1xf32> to vector<5x256xf32>
    %215 = arith.addf %212, %214 : vector<5x256xf32>
    %c0_161 = arith.constant 0 : index
    %c0_162 = arith.constant 0 : index
    %c0_163 = arith.constant 0 : index
    %216 = vector.load %arg10[%c0_161, %c0_162, %c0_163] : memref<1x5x256xf32, #tpu.memory_space<vmem>>, vector<1x5x256xf32>
    %217 = vector.shape_cast %216 : vector<1x5x256xf32> to vector<5x256xf32>
    %218 = vector.shape_cast %215 : vector<5x256xf32> to vector<1x5x256xf32>
    tpu.vector_store %arg10[%c0_161, %c0_162, %c0_163], %218 {strides = array<i32>} : memref<1x5x256xf32, #tpu.memory_space<vmem>>, vector<1x5x256xf32>,
    return
  }
  func.func @transform_0(%arg0: i32) -> (i32, i32, i32) {
    %c0_i32 = arith.constant 0 : i32
    %c0_i32_0 = arith.constant 0 : i32
    %c0_i32_1 = arith.constant 0 : i32
    return %arg0, %c0_i32, %c0_i32_0 : i32, i32, i32
  }
  func.func @transform_1(%arg0: i32) -> (i32, i32, i32) {
    %c0_i32 = arith.constant 0 : i32
    %c0_i32_0 = arith.constant 0 : i32
    %c0_i32_1 = arith.constant 0 : i32
    %c0_i32_2 = arith.constant 0 : i32
    return %c0_i32, %c0_i32_0, %c0_i32_1 : i32, i32, i32
  }
  func.func @transform_2(%arg0: i32) -> (i32, i32) {
    %c0_i32 = arith.constant 0 : i32
    %c0_i32_0 = arith.constant 0 : i32
    %c0_i32_1 = arith.constant 0 : i32
    return %c0_i32, %c0_i32_0 : i32, i32
  }
  func.func @transform_3(%arg0: i32) -> (i32, i32, i32) {
    %c0_i32 = arith.constant 0 : i32
    %c0_i32_0 = arith.constant 0 : i32
    %c0_i32_1 = arith.constant 0 : i32
    %c0_i32_2 = arith.constant 0 : i32
    return %c0_i32, %c0_i32_0, %c0_i32_1 : i32, i32, i32
  }
  func.func @transform_4(%arg0: i32) -> (i32, i32) {
    %c0_i32 = arith.constant 0 : i32
    %c0_i32_0 = arith.constant 0 : i32
    %c0_i32_1 = arith.constant 0 : i32
    return %c0_i32, %c0_i32_0 : i32, i32
  }
  func.func @transform_5(%arg0: i32) -> (i32, i32, i32) {
    %c0_i32 = arith.constant 0 : i32
    %c0_i32_0 = arith.constant 0 : i32
    %c0_i32_1 = arith.constant 0 : i32
    %c0_i32_2 = arith.constant 0 : i32
    return %c0_i32, %c0_i32_0, %c0_i32_1 : i32, i32, i32
  }
  func.func @transform_6(%arg0: i32) -> (i32, i32) {
    %c0_i32 = arith.constant 0 : i32
    %c0_i32_0 = arith.constant 0 : i32
    %c0_i32_1 = arith.constant 0 : i32
    return %c0_i32, %c0_i32_0 : i32, i32
  }
  func.func @transform_7(%arg0: i32) -> (i32, i32) {
    %c0_i32 = arith.constant 0 : i32
    %c0_i32_0 = arith.constant 0 : i32
    %c0_i32_1 = arith.constant 0 : i32
    return %c0_i32, %c0_i32_0 : i32, i32
  }
  func.func @transform_8(%arg0: i32) -> (i32, i32) {
    %c0_i32 = arith.constant 0 : i32
    %c0_i32_0 = arith.constant 0 : i32
    %c0_i32_1 = arith.constant 0 : i32
    return %c0_i32, %c0_i32_0 : i32, i32
  }
  func.func @transform_9(%arg0: i32) -> (i32, i32, i32) {
    %c0_i32 = arith.constant 0 : i32
    %c0_i32_0 = arith.constant 0 : i32
    %c0_i32_1 = arith.constant 0 : i32
    return %arg0, %c0_i32, %c0_i32_0 : i32, i32, i32
  }
}

</mosaic_0001>

<bundles_post_ra>
// kernel: tpu_custom_call.1
= control target key start
LH: loop header
LB: loop body
LE: loop exit
PB: predicated region body
PF: predicated region fallthrough
CT: control target
= control target key end

     0   :  { %s3565_s30 = smov 0   ;;  %s3954_s0 = inlined_call_operand.vmem [shape: f32[2,4,256], index: 0, kind: input, shape index: {}]   ;;  %s3955_s1 = inlined_call_operand.vmem [shape: f32[9,4,4], index: 1, kind: input, shape index: {}]   ;;  %s3956_s2 = inlined_call_operand.vmem [shape: f32[4,1], index: 2, kind: input, shape index: {}]   ;;  %s3957_s3 = inlined_call_operand.vmem [shape: f32[9,4,8], index: 3, kind: input, shape index: {}]   ;;  %s3958_s4 = inlined_call_operand.vmem [shape: f32[4,1], index: 4, kind: input, shape index: {}]   ;;  %s3959_s5 = inlined_call_operand.vmem [shape: f32[9,4,12], index: 5, kind: input, shape index: {}]   ;;  %s3960_s6 = inlined_call_operand.vmem [shape: f32[4,1], index: 6, kind: input, shape index: {}]   ;;  %s3961_s7 = inlined_call_operand.vmem [shape: f32[5,16], index: 7, kind: input, shape index: {}]   ;;  %s3962_s8 = inlined_call_operand.vmem [shape: f32[5,1], index: 8, kind: input, shape index: {}]   ;;  %s3963_s9 = inlined_call_operand.vmem [shape: f32[2,5,256], index: 9, kind: output, shape index: {}]  }
   0x1 LB: > { %s3120_s10 = sadd.s32 4294967295, %s3489_s30   ;;  %p3124_p0 = scmp.ge.s32.totalorder %s3489_s30, 1  ;;  %s3489_s30 = sphi %s3565_s30, %s19_s30  }
   0x2   : > { %p287_p1 = scmp.lt.s32.totalorder %s3489_s30, 3 }
   0x4   : > { %p288_p2 = pnand %p3124_p0, %p287_p1 }
   0x5   : > { %v3491_v0 = vmov (!%p288_p2), 0.0   ;;  %p323_p3 = scmp.lt.s32.totalorder (!%p288_p2), %s3120_s10, 1  ;;  %s3492_s15 = smov (!%p288_p2), 34   ;;  %v3499_v9 = vmov (!%p288_p2), 0   ;;  %v1225_v10 = vld [vmem:[%s3956_s2] sm:$0xf] (!%p288_p2) }
   0x6   : > { %291 = sbr.rel (%p288_p2) target bundleno = 1425 (0x591), region = 56  ;;  %333 = vst [vmem:[#allocation2] sm:$0xff] (!%p288_p2), %v3491_v0  ;;  %334 = vst [vmem:[#allocation2 + $0x20] sm:$0xff] (!%p288_p2), %v3491_v0  ;;  %584 = vmatprep.mubr.f32.mxu0 (!%p288_p2), %v3491_v0  ;;  %497 = vmatprep.mubr.f32.mxu1 (!%p288_p2), %v3491_v0  ;;  %s3493_s16 = smov (!%p288_p2), 98   ;;  %vm428_vm0 = vcmask (!%p288_p2), 1043456   ;;  %vm510_vm1 = vcmask (!%p288_p2), 277504  }
   0x7   : > { %335 = vst [vmem:[#allocation2 + $0x18] sm:$0xff] (!%p288_p2), %v3491_v0  ;;  %336 = vst [vmem:[#allocation2 + $0x38] sm:$0xff] (!%p288_p2), %v3491_v0  ;;  %s3494_s17 = smov (!%p288_p2), 2   ;;  %s3495_s18 = smov (!%p288_p2), 126   ;;  %3359 = vset.pattern.permute.xlu0 (!%p288_p2), %v3499_v9  ;;  %3480 = vset.pattern.permute.xlu1 (!%p288_p2), %v3499_v9  ;;  %vm605_vm2 = vcmask (!%p288_p2), 801792   ;;  %vm424_vm3 = vcmask (!%p288_p2), 31744  }
   0x8   : > { %s3496_s19 = smov (!%p288_p2), 32   ;;  %s3497_s20 = smov (!%p288_p2), 30   ;;  %v409_v21 = vld [vmem:[%s3955_s1] sm:$0xf] (!%p288_p2)  ;;  %vm421_vm4 = vcmask (!%p288_p2), 15360   ;;  %vm962_vm5 = vcmask (!%p288_p2), 1031168  }
   0x9   : > { %s3498_s21 = smov (!%p288_p2), 96   ;;  %s3500_s22 = smov (!%p288_p2), 94   ;;  %v3141_v28 = vld [vmem:[%s3955_s1 + $0xc] sm:$0xf] (!%p288_p2)  ;;  %v3148_v33 = vld [vmem:[%s3955_s1 + $0x18] sm:$0xf] (!%p288_p2) }
   0xa   : > { %v3153_v34 = vld [vmem:[%s3955_s1 + $0x10] sm:$0xf] (!%p288_p2)  ;;  %vm778_vm6 = vcmask (!%p288_p2), 261120   ;;  %v3165_v39 = vld [vmem:[%s3955_s1 + $0x14] sm:$0xf] (!%p288_p2)  ;;  %vm1049_vm7 = vcmask (!%p288_p2), 244736  }
   0xb   : > { %v3152_v45 = vld [vmem:[%s3955_s1 + $0x4] sm:$0xf] (!%p288_p2)  ;;  %v3164_v48 = vld [vmem:[%s3955_s1 + $0x8] sm:$0xf] (!%p288_p2)  ;;  %vm867_vm8 = vcmask (!%p288_p2), 785408   ;;  %vm1138_vm9 = vcmask (!%p288_p2), 769024  }
   0xc   : > { %v3172_v55 = vld [vmem:[%s3955_s1 + $0x20] sm:$0xf] (!%p288_p2)  ;;  %v3160_v58 = vld [vmem:[%s3955_s1 + $0x1c] sm:$0xf] (!%p288_p2)  ;;  %s3501_s24 = smov (!%p288_p2), 3   ;;  %s3502_s25 = smov (!%p288_p2), 83  }
   0xd   : > { %s3967_s10 = smov (!%p323_p3, %s3120_s10), 1  ;;  %v406_v2 = vld [vmem:[#allocation2] sm:$0xf]  ;;  %s3503_s26 = smov 51   ;;  %vm1263_vm14 = vcmask 64512   ;;  %vm1258_vm15 = vcmask 23552  }
   0xe   : > { %s3231_s11 = sshll.u32 %s3967_s10, 3  ;;  %v593_v3 = vld [vmem:[#allocation2 + $0x18] sm:$0xf]  ;;  %504 = vrot.lane.b32.xlu1 %v406_v2, %s3492_s15  ;;  %s3504_s27 = smov 125  }
   0xf   : > { %s327_s14 = scalar_lea.vmem %s3954_s0, %s3231_s11  ;;  %603 = vrot.lane.b32.xlu0 %v593_v3, %s3493_s16  ;;  %s3505_s11 = smov 48  }
  0x10   : > { %v337_v1 = vld [vmem:[%s327_s14] sm:$0xff]  ;;  %s3506_s12 = smov 45   ;;  %s3507_s13 = smov 80  }
  0x11   : > { %341 = vst [vmem:[#allocation2 + $0x8] sm:$0xf] %v337_v1  ;;  %v339_v4 = vcombine.high %v337_v1, %v337_v1  ;;  %s3508_s14 = smov 77  }
  0x12   : > { %415 = vrot.lane.b32.xlu1 %v406_v2, %s3494_s17 }
  0x13   : > { %342 = vst [vmem:[#allocation2 + $0x10] sm:$0xf] %v339_v4 }
  0x18   : > { %v3585_v5 = vld [vmem:[#allocation2 + $0x8] sm:$0xf] }
  0x19   : > { %506 = vrot.lane.b32.xlu0 %v3585_v5, %s3492_s15  ;;  %417 = vrot.lane.b32.xlu1 %v3585_v5, %s3494_s17  ;;  %v591_v6 = vld [vmem:[#allocation2 + $0x8] sm:$0xf] }
  0x1a   : > { %v592_v7 = vld [vmem:[#allocation2 + $0x10] sm:$0xf] }
  0x1b   : > { %v3589_v8 = vld [vmem:[#allocation2 + $0x10] sm:$0xf] }
  0x1d   : > { %599 = vrot.lane.b32.xlu0 %v591_v6, %s3493_s16  ;;  %601 = vrot.lane.b32.xlu1 %v592_v7, %s3493_s16  ;;  %s3512_s16 = smov 64  }
  0x21   : > { %508 = vrot.lane.b32.xlu0 %v3589_v8, %s3492_s15  ;;  %958 = vrot.lane.b32.xlu1 %v592_v7, %s3495_s18 }
  0x25   : > { %419 = vrot.lane.b32.xlu0 %v3589_v8, %s3494_s17  ;;  %956 = vrot.lane.b32.xlu1 %v591_v6, %s3495_s18  ;;  %s3509_s17 = smov 68  }
  0x29   : > { %960 = vrot.lane.b32.xlu0 %v593_v3, %s3495_s18  ;;  %776 = vrot.lane.b32.xlu1 %v3589_v8, %s3496_s19  ;;  %s3510_s18 = smov 4  }
  0x2d   : > { %774 = vrot.lane.b32.xlu0 %v3585_v5, %s3496_s19  ;;  %1047 = vrot.lane.b32.xlu1 %v3589_v8, %s3497_s20 }
  0x31   : > { %1045 = vrot.lane.b32.xlu0 %v3585_v5, %s3497_s20  ;;  %1043 = vrot.lane.b32.xlu1 %v406_v2, %s3497_s20 }
  0x35   : > { %772 = vrot.lane.b32.xlu0 %v406_v2, %s3496_s19  ;;  %865 = vrot.lane.b32.xlu1 %v593_v3, %s3498_s21  ;;  %v343_v2 = vlaneseq  ;;  %s3513_s19 = smov 124  }
  0x37   : > { %v344_v4 = vand.u32 127, %v343_v2 }
  0x39   : > { %863 = vrot.lane.b32.xlu0 %v592_v7, %s3498_s21  ;;  %1136 = vrot.lane.b32.xlu1 %v593_v3, %s3500_s22 }
  0x3d   : > { %1134 = vrot.lane.b32.xlu0 %v592_v7, %s3500_s22  ;;  %1132 = vrot.lane.b32.xlu1 %v591_v6, %s3500_s22 }
  0x41   : > { %861 = vrot.lane.b32.xlu0 %v591_v6, %s3498_s21  ;;  %v3671_v6 = vand.u32 15, %v344_v4  ;;  %s3514_s21 = smov 60  }
  0x43   : > { %vm382_vm10 = vcmp.ge.s32.totalorder %v3671_v6, 2  ;;  %vm388_vm12 = vcmp.lt.s32.totalorder %v3671_v6, 14 }
  0x45   : > { %1228 = vperm.xlu0 %3359, %v1225_v10  }
  0x49   : > { %1252 = vrot.lane.b32.xlu0 %v3491_v0, %s3501_s24 }
  0x80   : > { %v505_v11 = vpop.permute.xlu1 %504 }
  0x81   : > { %v604_v12 = vpop.permute.xlu0 %603 }
  0x84   : > { %v416_v13 = vpop.permute.xlu1 %415 }
  0x8b   : > { %v507_v14 = vpop.permute.xlu0 %506  ;;  %v418_v15 = vpop.permute.xlu1 %417 }
  0x8c   : > { %v511_v22 = vsel %vm510_vm1, %v505_v11, %v507_v14  ;;  %v422_v29 = vsel %vm421_vm4, %v416_v13, %v418_v15  ;;  %v3135_v11 = vsel %vm388_vm12, 1.0, %v3491_v0 }
  0x8f   : > { %v600_v16 = vpop.permute.xlu0 %599  ;;  %v602_v17 = vpop.permute.xlu1 %601 }
  0x90   : > { %v607_v23 = vsel %vm605_vm2, %v602_v17, %v604_v12  ;;  %v606_v24 = vsel %vm605_vm2, %v600_v16, %v602_v17  ;;  %vm1437_vm2 = vcmask 678912  }
  0x93   : > { %v509_v18 = vpop.permute.xlu0 %508  ;;  %v959_v19 = vpop.permute.xlu1 %958 }
  0x94   : > { %v512_v20 = vsel %vm510_vm1, %v507_v14, %v509_v18  ;;  %vm1344_vm1 = vcmask 416768  }
  0x95   : > { %3145 = vmatprep.subr.msk.mxu0 %vm428_vm0, %v512_v20 }
  0x96   : > { %3146 = vmatpush1.msk.msra.mxu0 %vm428_vm0, %v511_v22 }
  0x97   : > { %3147 = vmatmul.mubr.msk.f32.vlgmr.msra.gmra.mrb[0].mxu0 %vm424_vm3, %v409_v21  ;;  %3149 = vmatprep.subr.msk.mxu0 %vm428_vm0, %v607_v23  ;;  %v420_v25 = vpop.permute.xlu0 %419  ;;  %v957_v26 = vpop.permute.xlu1 %956 }
  0x98   : > { %3150 = vmatpush1.msk.msra.mxu0 %vm428_vm0, %v606_v24  ;;  %v423_v27 = vsel %vm421_vm4, %v418_v15, %v420_v25  ;;  %679 = vmatprep.mubr.f32.mxu0 %v3491_v0  ;;  %v963_v35 = vsel %vm962_vm5, %v957_v26, %v959_v19  ;;  %vm1784_vm4 = vcmask 1022976  }
  0x99   : > { %3142 = vmatprep.subr.msk.mxu1 %vm428_vm0, %v423_v27 }
  0x9a   : > { %3143 = vmatpush1.msk.msra.mxu1 %vm428_vm0, %v422_v29 }
  0x9b   : > { %v961_v30 = vpop.permute.xlu0 %960  ;;  %3144 = vmatmul.mubr.msk.f32.vlgmr.msra.gmra.mrb[0].mxu1 %vm424_vm3, %v3141_v28  ;;  %3154 = vmatprep.subr.msk.mxu1 %vm428_vm0, %v3589_v8  ;;  %v777_v32 = vpop.permute.xlu1 %776  ;;  %v3133_v8 = vsel %vm382_vm10, 1.0, %v3491_v0 }
  0x9c   : > { %v964_v31 = vsel %vm962_vm5, %v959_v19, %v961_v30  ;;  %3155 = vmatpush1.msk.msra.mxu1 %vm428_vm0, %v3585_v5  ;;  %765 = vmatprep.mubr.f32.mxu1 %v3491_v0  ;;  %v345_v5 = vadd.s32 128, %v344_v4  ;;  %v3188_v4 = vld [vmem:[%s3957_s3 + $0x14] sm:$0xf]  ;;  %vm1604_vm5 = vcmask 392192  }
  0x9d   : > { %3166 = vmatprep.subr.msk.mxu0 %vm428_vm0, %v964_v31 }
  0x9e   : > { %v3673_v7 = vand.u32 15, %v345_v5 }
  0x9f   : > { %3151 = vmatmul.mubr.msk.f32.vlgmr.msra.gmra.mrb[0].mxu0 %vm424_vm3, %v3148_v33  ;;  %v775_v36 = vpop.permute.xlu0 %774  ;;  %3156 = vmatmul.mubr.msk.f32.vlgmr.msra.gmra.mrb[2].mxu1 %vm424_vm3, %v3153_v34  ;;  %v1048_v38 = vpop.permute.xlu1 %1047  ;;  %v3182_v33 = vld [vmem:[%s3957_s3 + $0x10] sm:$0xf]  ;;  %v2041_v34 = vld [vmem:[%s3958_s4] sm:$0xf] }
  0xa0   : > { %3167 = vmatpush1.msk.msra.mxu0 %vm428_vm0, %v963_v35  ;;  %v780_v37 = vsel %vm778_vm6, %v775_v36, %v777_v32  ;;  %1036 = vmatprep.mubr.f32.mxu0 %v3491_v0  ;;  %vm383_vm11 = vcmp.ge.s32.totalorder %v3673_v7, 2  ;;  %vm389_vm13 = vcmp.lt.s32.totalorder %v3673_v7, 14  ;;  %vm377_vm10 = vcmp.ge.s32.totalorder %v3673_v7, 3 }
  0xa1   : > { %3157 = vmatprep.subr.msk.mxu1 %vm428_vm0, %v780_v37  ;;  %852 = vmatprep.mubr.f32.mxu1 %v3491_v0  ;;  %v3134_v10 = vsel %vm383_vm11, 1.0, %v3491_v0  ;;  %v3136_v13 = vsel %vm389_vm13, 1.0, %v3491_v0  ;;  %vm394_vm11 = vcmp.lt.s32.totalorder %v3671_v6, 13  ;;  %vm395_vm12 = vcmp.lt.s32.totalorder %v3673_v7, 13 }
  0xa2   : > { %vm3511_vm13 = vmmov 1  }
  0xa3   : > { %v1046_v40 = vpop.permute.xlu0 %1045  ;;  %3168 = vmatmul.mubr.msk.f32.vlgmr.msra.gmra.mrb[2].mxu0 %vm424_vm3, %v3165_v39  ;;  %v1044_v42 = vpop.permute.xlu1 %1043 }
  0xa4   : > { %v1051_v41 = vsel %vm1049_vm7, %v1046_v40, %v1048_v38  ;;  %1123 = vmatprep.mubr.f32.mxu0 %v3491_v0  ;;  %v1050_v43 = vsel %vm1049_vm7, %v1044_v42, %v1046_v40  ;;  %vm1691_vm7 = vcmask 654336  }
  0xa5   : > { %3169 = vmatprep.subr.msk.mxu0 %vm428_vm0, %v1051_v41 }
  0xa6   : > { %3170 = vmatpush1.msk.msra.mxu0 %vm428_vm0, %v1050_v43 }
  0xa7   : > { %v773_v44 = vpop.permute.xlu0 %772  ;;  %v866_v47 = vpop.permute.xlu1 %865 }
  0xa8   : > { %v779_v46 = vsel %vm778_vm6, %v773_v44, %v775_v36  ;;  %v2056_v36 = vld [vmem:[#allocation2 + $0x20] sm:$0xf]  ;;  %vm1869_vm6 = vcmask 367616  }
  0xa9   : > { %3158 = vmatpush1.msk.msra.mxu1 %vm428_vm0, %v779_v46  ;;  %v3729_v37 = vpack.i.bf16 %v2056_v36, %v3491_v0 }
  0xaa   : > { %3159 = vmatmul.mubr.msk.f32.vlgmr.msra.gmra.mrb[2].mxu1 %vm424_vm3, %v3152_v45 }
  0xab   : > { %v864_v49 = vpop.permute.xlu0 %863  ;;  %3171 = vmatmul.mubr.msk.f32.vlgmr.msra.gmra.mrb[2].mxu0 %vm424_vm3, %v3164_v48  ;;  %941 = vmatprep.mubr.f32.mxu1 %v3491_v0  ;;  %v1137_v51 = vpop.permute.xlu1 %1136 }
  0xac   : > { %v869_v50 = vsel %vm867_vm8, %v864_v49, %v866_v47  ;;  %1212 = vmatprep.mubr.f32.mxu0 %v3491_v0  ;;  %v3176_v47 = vld [vmem:[%s3957_s3 + $0xc] sm:$0xf] }
  0xad   : > { %3161 = vmatprep.subr.msk.mxu1 %vm428_vm0, %v869_v50 }
  0xaf   : > { %v1135_v52 = vpop.permute.xlu0 %1134  ;;  %v1133_v54 = vpop.permute.xlu1 %1132 }
  0xb0   : > { %v1140_v53 = vsel %vm1138_vm9, %v1135_v52, %v1137_v51  ;;  %v1139_v56 = vsel %vm1138_vm9, %v1133_v54, %v1135_v52  ;;  %vm376_vm9 = vcmp.ge.s32.totalorder %v3671_v6, 3 }
  0xb1   : > { %3173 = vmatprep.subr.msk.mxu0 %vm428_vm0, %v1140_v53 }
  0xb2   : > { %3174 = vmatpush1.msk.msra.mxu0 %vm428_vm0, %v1139_v56  ;;  %v1246_v56 = vld [vmem:[%s3957_s3] sm:$0xf] }
  0xb3   : > { %v862_v57 = vpop.permute.xlu0 %861  ;;  %3175 = vmatmul.mubr.msk.f32.vlgmr.msra.gmra.mrb[2].mxu0 %vm424_vm3, %v3172_v55 }
  0xb4   : > { %v868_v59 = vsel %vm867_vm8, %v862_v57, %v864_v49  ;;  %1591 = vmatprep.mubr.f32.mxu0 %v3491_v0  ;;  %vm1956_vm8 = vcmask 629760  }
  0xb5   : > { %3162 = vmatpush1.msk.msra.mxu1 %vm428_vm0, %v868_v59 }
  0xb6   : > { %3163 = vmatmul.mubr.msk.f32.vlgmr.msra.gmra.mrb[2].mxu1 %vm424_vm3, %v3160_v58 }
  0xb7   : > { %1331 = vmatprep.mubr.f32.mxu1 %v3491_v0 }
  0xc4   : > { %v1229_v22 = vpop.permute.xlu0 %1228 }
  0xc8   : > { %v1253_v39 = vpop.permute.xlu0 %1252 }
 0x16e   : > { %v499_v60 = vpop.f32.mrb[0].mxu1 }
 0x16f   : > { %v501_v61 = vpop.f32.mrb[1].mxu1 }
 0x172   : > { %v681_v62 = vpop.f32.mrb[0].mxu0 }
 0x173   : > { %v3291_v63 = vadd.f32 %v681_v62, %v499_v60  ;;  %v683_v1 = vpop.f32.mrb[1].mxu0  ;;  %v3179_v62 = vld [vmem:[%s3957_s3 + $0x18] sm:$0xf] }
 0x174   : > { %v3292_v3 = vadd.f32 %v683_v1, %v501_v61 }
 0x175   : > { %v688_v14 = vmul.f32 %v3291_v63, %v3133_v8 }
 0x176   : > { %v689_v16 = vmul.f32 %v3292_v3, %v3134_v10  ;;  %v3181_v10 = vld [vmem:[%s3957_s3 + $0x4] sm:$0xf] }
 0x186   : > { %v1214_v9 = vpop.f32.mrb[2].mxu0 }
 0x187   : > { %v1216_v12 = vpop.f32.mrb[3].mxu0  ;;  %v1221_v17 = vmul.f32 %v3135_v11, %v1214_v9 }
 0x188   : > { %v1222_v20 = vmul.f32 %v3136_v13, %v1216_v12 }
 0x189   : > { %v943_v15 = vpop.f32.mrb[2].mxu1 }
 0x18a   : > { %v950_v18 = vadd.f32 %v943_v15, %v688_v14  ;;  %v945_v19 = vpop.f32.mrb[3].mxu1  ;;  %v3187_v14 = vld [vmem:[%s3957_s3 + $0x8] sm:$0xf] }
 0x18b   : > { %v951_v21 = vadd.f32 %v945_v19, %v689_v16  ;;  %v3185_v19 = vld [vmem:[%s3957_s3 + $0x1c] sm:$0xf] }
 0x18c   : > { %v1223_v23 = vadd.f32 %v1221_v17, %v950_v18 }
 0x18d   : > { %v1224_v24 = vadd.f32 %v1222_v20, %v951_v21 }
 0x18e   : > { %v1231_v25 = vadd.f32 %v1229_v22, %v1223_v23 }
 0x18f   : > { %v1232_v26 = vadd.f32 %v1229_v22, %v1224_v24  ;;  %v3191_v24 = vld [vmem:[%s3957_s3 + $0x20] sm:$0xf] }
 0x190   : > { %v1233_v27 = vmax.f32 %v1231_v25, 0.0 }
 0x191   : > { %v1234_v28 = vmax.f32 %v1232_v26, 0.0 }
 0x192   : > { %v1237_v29 = vrot.slane %v1233_v27, 4 }
 0x193   : > { %v1238_v30 = vrot.slane %v1234_v28, 4  ;;  %v3131_v28 = vsel %vm376_vm9, 1.0, %v3491_v0 }
 0x194   : > { %1241 = vst [vmem:[#allocation2 + $0x8] sm:$0xf0] %v1237_v29  ;;  %v3132_v29 = vsel %vm377_vm10, 1.0, %v3491_v0 }
 0x195   : > { %1242 = vst [vmem:[#allocation2 + $0x10] sm:$0xf0] %v1238_v30 }
 0x19b   : > { %v3683_v31 = vld [vmem:[#allocation2 + $0x8] sm:$0xff] }
 0x19c   : > { %1431 = vrot.lane.b32.xlu0 %v3683_v31, %s3502_s25  ;;  %1254 = vrot.lane.b32.xlu1 %v3683_v31, %s3501_s24  ;;  %v3688_v32 = vld [vmem:[#allocation2 + $0x10] sm:$0xff] }
 0x19d   : > { %1527 = vmatprep.subr.mxu0 %v3688_v32  ;;  %v3722_v35 = vpack.i.bf16 %v3688_v32, %v3683_v31  ;;  %v3737_v38 = vpack.i.bf16 %v3491_v0, %v3688_v32 }
 0x19e   : > { %1528 = vmatpush1.msra.mxu0 %v3683_v31 }
 0x19f   : > { %3183 = vmatmul.mubr.msk.f32.vlgmr.msra.gmra.mrb[4].mxu0 %vm1263_vm14, %v3182_v33 }
 0x1a0   : > { %1342 = vrot.lane.b32.xlu0 %v3688_v32, %s3503_s26  ;;  %1340 = vrot.lane.b32.xlu1 %v3683_v31, %s3503_s26 }
 0x1a1   : > { %1676 = vmatprep.mubr.f32.mxu0 %v3491_v0 }
 0x1a4   : > { %1782 = vrot.lane.b32.xlu0 %v3491_v0, %s3504_s27  ;;  %1256 = vrot.lane.b32.xlu1 %v3688_v32, %s3501_s24 }
 0x1a8   : > { %1433 = vrot.lane.b32.xlu0 %v3688_v32, %s3502_s25  ;;  %1338 = vrot.lane.b32.xlu1 %v3491_v0, %s3503_s26 }
 0x1ac   : > { %1600 = vrot.lane.b32.xlu0 %v3683_v31, %s3505_s11  ;;  %1435 = vrot.lane.b32.xlu1 %v3491_v0, %s3502_s25 }
 0x1b0   : > { %1865 = vrot.lane.b32.xlu0 %v3683_v31, %s3506_s12  ;;  %1778 = vrot.lane.b32.xlu1 %v3683_v31, %s3504_s27 }
 0x1b4   : > { %1598 = vrot.lane.b32.xlu0 %v3491_v0, %s3505_s11  ;;  %1863 = vrot.lane.b32.xlu1 %v3491_v0, %s3506_s12 }
 0x1b8   : > { %1687 = vrot.lane.b32.xlu0 %v3688_v32, %s3507_s13  ;;  %1780 = vrot.lane.b32.xlu1 %v3688_v32, %s3504_s27 }
 0x1bc   : > { %1952 = vrot.lane.b32.xlu0 %v3688_v32, %s3508_s14  ;;  %1602 = vrot.lane.b32.xlu1 %v3688_v32, %s3505_s11 }
 0x1c0   : > { %1685 = vrot.lane.b32.xlu0 %v3683_v31, %s3507_s13  ;;  %1867 = vrot.lane.b32.xlu1 %v3688_v32, %s3506_s12 }
 0x1c4   : > { %2044 = vperm.xlu0 %3359, %v2041_v34   ;;  %1689 = vrot.lane.b32.xlu1 %v3491_v0, %s3507_s13 }
 0x1c8   : > { %3371 = vrot.lane.b32.xlu0 %v3722_v35, %s3509_s17  ;;  %1954 = vrot.lane.b32.xlu1 %v3491_v0, %s3508_s14 }
 0x1cc   : > { %1950 = vrot.lane.b32.xlu1 %v3683_v31, %s3508_s14 }
 0x1d0   : > { %3361 = vrot.lane.b32.xlu1 %v3729_v37, %s3510_s18 }
 0x1d4   : > { %3366 = vrot.lane.b32.xlu1 %v3722_v35, %s3510_s18 }
 0x1d8   : > { %3386 = vrot.lane.b32.xlu1 %v3737_v38, %s3509_s17 }
 0x20e   : > { %v1255_v40 = vpop.permute.xlu1 %1254  ;;  %v1432_v41 = vpop.permute.xlu0 %1431 }
 0x20f   : > { %v1259_v48 = vsel %vm1258_vm15, %v1253_v39, %v1255_v40 }
 0x212   : > { %v1341_v42 = vpop.permute.xlu1 %1340  ;;  %v1343_v43 = vpop.permute.xlu0 %1342 }
 0x213   : > { %v1346_v49 = vsel %vm1344_vm1, %v1341_v42, %v1343_v43 }
 0x216   : > { %v1257_v44 = vpop.permute.xlu1 %1256  ;;  %v1783_v45 = vpop.permute.xlu0 %1782 }
 0x217   : > { %v1260_v46 = vsel %vm1258_vm15, %v1255_v40, %v1257_v44  ;;  %vm2177_vm15 = vcmask 556032  }
 0x218   : > { %1267 = vmatprep.subr.mxu1 %v1260_v46 }
 0x219   : > { %1268 = vmatpush1.msra.mxu1 %v1259_v48 }
 0x21a   : > { %v1339_v50 = vpop.permute.xlu1 %1338  ;;  %3177 = vmatmul.mubr.msk.f32.vlgmr.msra.gmra.mrb[4].mxu1 %vm1263_vm14, %v3176_v47  ;;  %1352 = vmatprep.subr.mxu1 %v1346_v49  ;;  %v1434_v51 = vpop.permute.xlu0 %1433 }
 0x21b   : > { %v1345_v52 = vsel %vm1344_vm1, %v1339_v50, %v1341_v42  ;;  %1416 = vmatprep.mubr.f32.mxu1 %v3491_v0  ;;  %v1438_v57 = vsel %vm1437_vm2, %v1432_v41, %v1434_v51  ;;  %v3137_v41 = vsel %vm394_vm11, 1.0, %v3491_v0  ;;  %v3138_v42 = vsel %vm395_vm12, 1.0, %v3491_v0 }
 0x21c   : > { %1353 = vmatpush1.msra.mxu1 %v1345_v52  ;;  %vm2470_vm1 = vcmask 523264  }
 0x21e   : > { %v1436_v53 = vpop.permute.xlu1 %1435  ;;  %v1601_v54 = vpop.permute.xlu0 %1600 }
 0x21f   : > { %v1439_v55 = vsel %vm1437_vm2, %v1434_v51, %v1436_v53  ;;  %vm2770_vm2 = vcmask 490496  }
 0x220   : > { %1445 = vmatprep.subr.mxu1 %v1439_v55 }
 0x222   : > { %v1779_v58 = vpop.permute.xlu1 %1778  ;;  %3178 = vmatmul.mubr.msk.f32.vlgmr.msra.gmra.mrb[4].mxu1 %vm1263_vm14, %v1246_v56  ;;  %v1866_v59 = vpop.permute.xlu0 %1865 }
 0x223   : > { %1446 = vmatpush1.msra.mxu1 %v1438_v57  ;;  %1509 = vmatprep.mubr.f32.mxu1 %v3491_v0 }
 0x226   : > { %v1864_v60 = vpop.permute.xlu1 %1863  ;;  %v1599_v61 = vpop.permute.xlu0 %1598 }
 0x227   : > { %v1605_v11 = vsel %vm1604_vm5, %v1599_v61, %v1601_v54  ;;  %v1870_v15 = vsel %vm1869_vm6, %v1864_v60, %v1866_v59 }
 0x22a   : > { %v1781_v63 = vpop.permute.xlu1 %1780  ;;  %3180 = vmatmul.mubr.msk.f32.vlgmr.msra.gmra.mrb[4].mxu1 %vm1263_vm14, %v3179_v62  ;;  %v1688_v1 = vpop.permute.xlu0 %1687 }
 0x22b   : > { %v1785_v2 = vsel %vm1784_vm4, %v1779_v58, %v1781_v63  ;;  %v1786_v3 = vsel %vm1784_vm4, %v1781_v63, %v1783_v45  ;;  %1856 = vmatprep.mubr.f32.mxu1 %v3491_v0  ;;  %v2267_v63 = vld [vmem:[#allocation2 + $0x38] sm:$0xf]  ;;  %vm370_vm4 = vcmp.ge.s32.totalorder %v3671_v6, 4 }
 0x22c   : > { %1792 = vmatprep.subr.mxu1 %v1786_v3  ;;  %v2959_v3 = vld [vmem:[%s3960_s6] sm:$0xf] }
 0x22d   : > { %1793 = vmatpush1.msra.mxu1 %v1785_v2  ;;  %v3205_v2 = vld [vmem:[%s3959_s5 + $0x10] sm:$0xf] }
 0x22e   : > { %v1603_v5 = vpop.permute.xlu1 %1602  ;;  %3189 = vmatmul.mubr.msk.f32.vlgmr.msra.gmra.mrb[6].mxu1 %vm1263_vm14, %v3188_v4  ;;  %v1953_v8 = vpop.permute.xlu0 %1952 }
 0x22f   : > { %v1606_v9 = vsel %vm1604_vm5, %v1601_v54, %v1603_v5  ;;  %1941 = vmatprep.mubr.f32.mxu1 %v3491_v0  ;;  %vm371_vm5 = vcmp.ge.s32.totalorder %v3673_v7, 4 }
 0x230   : > { %1612 = vmatprep.subr.mxu0 %v1606_v9 }
 0x231   : > { %1613 = vmatpush1.msra.mxu0 %v1605_v11 }
 0x232   : > { %v1868_v12 = vpop.permute.xlu1 %1867  ;;  %3184 = vmatmul.mubr.msk.f32.vlgmr.msra.gmra.mrb[4].mxu0 %vm1263_vm14, %v3181_v10  ;;  %v1686_v16 = vpop.permute.xlu0 %1685 }
 0x233   : > { %v1871_v13 = vsel %vm1869_vm6, %v1866_v59, %v1868_v12  ;;  %1763 = vmatprep.mubr.f32.mxu0 %v3491_v0  ;;  %v1692_v20 = vsel %vm1691_vm7, %v1686_v16, %v1688_v1  ;;  %vm400_vm6 = vcmp.lt.s32.totalorder %v3671_v6, 12 }
 0x234   : > { %1877 = vmatprep.subr.mxu1 %v1871_v13 }
 0x235   : > { %1878 = vmatpush1.msra.mxu1 %v1870_v15 }
 0x236   : > { %v1690_v17 = vpop.permute.xlu1 %1689  ;;  %3190 = vmatmul.mubr.msk.f32.vlgmr.msra.gmra.mrb[6].mxu1 %vm1263_vm14, %v3187_v14 }
 0x237   : > { %v1693_v18 = vsel %vm1691_vm7, %v1688_v1, %v1690_v17  ;;  %2028 = vmatprep.mubr.f32.mxu1 %v3491_v0  ;;  %vm401_vm7 = vcmp.lt.s32.totalorder %v3673_v7, 12 }
 0x238   : > { %1699 = vmatprep.subr.mxu0 %v1693_v18 }
 0x239   : > { %1700 = vmatpush1.msra.mxu0 %v1692_v20 }
 0x23a   : > { %v1955_v21 = vpop.permute.xlu1 %1954  ;;  %3186 = vmatmul.mubr.msk.f32.vlgmr.msra.gmra.mrb[4].mxu0 %vm1263_vm14, %v3185_v19 }
 0x23b   : > { %v1958_v22 = vsel %vm1956_vm8, %v1953_v8, %v1955_v21  ;;  %2158 = vmatprep.mubr.f32.mxu0 %v3491_v0 }
 0x23c   : > { %1964 = vmatprep.subr.mxu1 %v1958_v22 }
 0x23e   : > { %v1951_v23 = vpop.permute.xlu1 %1950 }
 0x23f   : > { %v1957_v25 = vsel %vm1956_vm8, %v1951_v23, %v1953_v8  ;;  %vm2988_vm8 = vcmask 130048  }
 0x240   : > { %1965 = vmatpush1.msra.mxu1 %v1957_v25 }
 0x241   : > { %3192 = vmatmul.mubr.msk.f32.vlgmr.msra.gmra.mrb[6].mxu1 %vm1263_vm14, %v3191_v24  ;;  %vm3790_vm14 = vmpackc.low %vm428_vm0, %vm3511_vm13  ;;  %vm2086_vm0 = vcmask 97280  }
 0x242   : > { %2451 = vmatprep.mubr.f32.mxu1 %v3491_v0 }
 0x243   : > { %v2045_v48 = vpop.permute.xlu0 %2044 }
 0x247   : > { %v3372_v8 = vpop.permute.xlu0 %3371 }
 0x248   : > { %v3374_v16 = vunpack.i.h.bf16 %v3372_v8  ;;  %v3373_v17 = vunpack.i.l.bf16 %v3372_v8 }
 0x2fd   : > { %v1511_v26 = vpop.f32.mrb[4].mxu1 }
 0x2fe   : > { %v1513_v27 = vpop.f32.mrb[5].mxu1  ;;  %v1518_v30 = vmul.f32 %v3131_v28, %v1511_v26 }
 0x2ff   : > { %v1519_v33 = vmul.f32 %v3132_v29, %v1513_v27  ;;  %v2179_v29 = vsel %vm2177_vm15, %v3373_v17, %v3374_v16 }
 0x30d   : > { %v1765_v34 = vpop.f32.mrb[4].mxu0 }
 0x30e   : > { %v1772_v36 = vadd.f32 %v1765_v34, %v1518_v30  ;;  %v1767_v39 = vpop.f32.mrb[5].mxu0 }
 0x30f   : > { %v1773_v40 = vadd.f32 %v1767_v39, %v1519_v33 }
 0x314   : > { %v2030_v43 = vpop.f32.mrb[6].mxu1 }
 0x315   : > { %v2037_v44 = vmul.f32 %v3137_v41, %v2030_v43  ;;  %v2032_v45 = vpop.f32.mrb[7].mxu1  ;;  %v3193_v41 = vld [vmem:[%s3959_s5 + $0xc] sm:$0xf] }
 0x316   : > { %v2038_v46 = vmul.f32 %v3138_v42, %v2032_v45 }
 0x317   : > { %v2039_v47 = vadd.f32 %v2037_v44, %v1772_v36 }
 0x318   : > { %v2040_v49 = vadd.f32 %v2038_v46, %v1773_v40 }
 0x319   : > { %v2047_v50 = vadd.f32 %v2045_v48, %v2039_v47 }
 0x31a   : > { %v2048_v51 = vadd.f32 %v2045_v48, %v2040_v49 }
 0x31b   : > { %v2049_v52 = vmax.f32 %v2047_v50, 0.0 }
 0x31c   : > { %v2050_v53 = vmax.f32 %v2048_v51, 0.0 }
 0x31d   : > { %2051 = vst [vmem:[#allocation2 + $0x28] sm:$0xf] %v2049_v52  ;;  %v2059_v52 = vld [vmem:[%s3959_s5] sm:$0xf] }
 0x31e   : > { %2052 = vst [vmem:[#allocation2 + $0x30] sm:$0xf] %v2050_v53 }
 0x324   : > { %v2057_v54 = vld [vmem:[#allocation2 + $0x28] sm:$0xf] }
 0x325   : > { %v2058_v55 = vld [vmem:[#allocation2 + $0x30] sm:$0xf]  ;;  %v3254_v59 = vpack.c.bf16 %v2057_v54, %v3683_v31  ;;  %v2265_v60 = vld [vmem:[#allocation2 + $0x28] sm:$0xf] }
 0x326   : > { %v3251_v57 = vpack.c.bf16 %v2058_v55, %v3688_v32  ;;  %v3390_v58 = vpack.i.bf16 %v2058_v55, %v2057_v54  ;;  %v3395_v61 = vpack.i.bf16 %v2265_v60, %v3683_v31  ;;  %v2266_v62 = vld [vmem:[#allocation2 + $0x30] sm:$0xf] }
 0x327   : > { %v3420_v1 = vpack.i.bf16 %v2267_v63, %v2266_v62 }
 0x328   : > { %3253 = vmatprep.subr.msk.bf16.mxu1 %vm3790_vm14, %v3251_v57  ;;  %3391 = vrot.lane.b32.xlu1 %v3390_v58, %s3509_s17 }
 0x329   : > { %3376 = vrot.lane.b32.xlu0 %v3390_v58, %s3510_s18  ;;  %3256 = vmatpush1.bf16.msk.msra.mxu1 %vm3790_vm14, %v3254_v59 }
 0x32c   : > { %3396 = vrot.lane.b32.xlu1 %v3395_v61, %s3509_s17  ;;  %3208 = vmatmul.mubr.msk.f32.vlgmr.msra.gmra.mrb[8].mxu1 %vm2086_vm0, %v3205_v2 }
 0x32d   : > { %3381 = vrot.lane.b32.xlu0 %v3729_v37, %s3509_s17  ;;  %2548 = vmatprep.mubr.f32.mxu1 %v3491_v0 }
 0x330   : > { %3411 = vrot.lane.b32.xlu1 %v3722_v35, %s3512_s16 }
 0x331   : > { %3401 = vrot.lane.b32.xlu0 %v3737_v38, %s3513_s19 }
 0x334   : > { %3421 = vrot.lane.b32.xlu1 %v3420_v1, %s3513_s19 }
 0x335   : > { %3406 = vrot.lane.b32.xlu0 %v3395_v61, %s3513_s19 }
 0x338   : > { %3426 = vrot.lane.b32.xlu1 %v3722_v35, %s3514_s21  ;;  %v2982_v35 = vld [vmem:[%s3962_s8] sm:$0x1f] }
 0x339   : > { %3416 = vrot.lane.b32.xlu0 %v3420_v1, %s3509_s17  ;;  %s3232_s17 = sshll.u32 %s3967_s10, 4 }
 0x33a   : > { %s332_s27 = scalar_lea.vmem %s3963_s9, %s3232_s17 }
 0x33c   : > { %3431 = vrot.lane.b32.xlu1 %v3729_v37, %s3512_s16 }
 0x33d   : > { %3436 = vrot.lane.b32.xlu0 %v3729_v37, %s3514_s21  ;;  %v3362_v37 = vpop.permute.xlu1 %3361 }
 0x33e   : > { %v3364_v12 = vunpack.i.h.bf16 %v3362_v37 }
 0x340   : > { %3441 = vrot.lane.b32.xlu1 %v3737_v38, %s3512_s16 }
 0x341   : > { %3456 = vrot.lane.b32.xlu0 %v3390_v58, %s3512_s16  ;;  %v3367_v4 = vpop.permute.xlu1 %3366 }
 0x342   : > { %v3368_v9 = vunpack.i.l.bf16 %v3367_v4  ;;  %v3369_v10 = vunpack.i.h.bf16 %v3367_v4 }
 0x344   : > { %3446 = vrot.lane.b32.xlu1 %v3737_v38, %s3514_s21  ;;  %v3363_v38 = vunpack.i.l.bf16 %v3362_v37  ;;  %v2081_v21 = vsel %vm424_vm3, %v3368_v9, %v3369_v10 }
 0x345   : > { %3461 = vrot.lane.b32.xlu0 %v3390_v58, %s3514_s21  ;;  %v3387_v5 = vpop.permute.xlu1 %3386 }
 0x346   : > { %v2080_v20 = vsel %vm424_vm3, %v3363_v38, %v3368_v9  ;;  %v3389_v46 = vunpack.i.h.bf16 %v3387_v5  ;;  %v3388_v47 = vunpack.i.l.bf16 %v3387_v5 }
 0x348   : > { %3451 = vrot.lane.b32.xlu1 %v3395_v61, %s3512_s16  ;;  %v2289_v60 = vsel %vm2177_vm15, %v3388_v47, %v3389_v46 }
 0x349   : > { %3466 = vrot.lane.b32.xlu0 %v3420_v1, %s3512_s16 }
 0x34c   : > { %2962 = vperm.xlu1 %3480, %v2959_v3  }
 0x34d   : > { %3471 = vrot.lane.b32.xlu0 %v3420_v1, %s3514_s21 }
 0x351   : > { %3476 = vrot.lane.b32.xlu0 %v3395_v61, %s3514_s21 }
 0x355   : > { %2985 = vperm.xlu0 %3359, %v2982_v35  }
 0x39a   : > { %v3392_v11 = vpop.permute.xlu1 %3391 }
 0x39b   : > { %v3394_v13 = vunpack.i.h.bf16 %v3392_v11  ;;  %v3393_v14 = vunpack.i.l.bf16 %v3392_v11  ;;  %v3377_v15 = vpop.permute.xlu0 %3376 }
 0x39c   : > { %v3379_v18 = vunpack.i.h.bf16 %v3377_v15  ;;  %v3378_v19 = vunpack.i.l.bf16 %v3377_v15  ;;  %v3200_v15 = vld [vmem:[%s3959_s5 + $0x18] sm:$0xf] }
 0x39d   : > { %v2181_v22 = vsel %vm2177_vm15, %v3393_v14, %v3394_v13 }
 0x39e   : > { %v2082_v23 = vsel %vm424_vm3, %v3364_v12, %v3378_v19  ;;  %v2083_v24 = vsel %vm424_vm3, %v3378_v19, %v3379_v18  ;;  %v3397_v25 = vpop.permute.xlu1 %3396  ;;  %v3239_v34 = vpack.c.bf16 %v2181_v22, %v2179_v29  ;;  %vm2673_vm3 = vcmask 1014784   ;;  %v3217_v29 = vld [vmem:[%s3959_s5 + $0x14] sm:$0xf] }
 0x39f   : > { %v3233_v26 = vpack.c.bf16 %v2083_v24, %v2081_v21  ;;  %v3236_v27 = vpack.c.bf16 %v2082_v23, %v2080_v20  ;;  %v3382_v28 = vpop.permute.xlu0 %3381  ;;  %v3398_v48 = vunpack.i.l.bf16 %v3397_v25  ;;  %v3399_v53 = vunpack.i.h.bf16 %v3397_v25 }
 0x3a0   : > { %v3384_v30 = vunpack.i.h.bf16 %v3382_v28  ;;  %v3383_v33 = vunpack.i.l.bf16 %v3382_v28  ;;  %v3879_v28 = vld [vmem:[#allocation2] sm:$0xff] }
 0x3a1   : > { %3235 = vmatprep.subr.msk.bf16.mxu0 %vm3790_vm14, %v3233_v26  ;;  %v2288_v63 = vsel %vm2177_vm15, %v3398_v48, %v3388_v47  ;;  %v3204_v48 = vld [vmem:[%s3959_s5 + $0x4] sm:$0xf] }
 0x3a2   : > { %v2180_v36 = vsel %vm2177_vm15, %v3384_v30, %v3393_v14  ;;  %v2178_v39 = vsel %vm2177_vm15, %v3383_v33, %v3373_v17  ;;  %3238 = vmatpush1.bf16.msk.msra.mxu0 %vm3790_vm14, %v3236_v27  ;;  %v3412_v40 = vpop.permute.xlu1 %3411 }
 0x3a3   : > { %v3242_v42 = vpack.c.bf16 %v2180_v36, %v2178_v39  ;;  %v3402_v43 = vpop.permute.xlu0 %3401  ;;  %3241 = vmatprep.subr.msk.bf16.mxu0 %vm3790_vm14, %v3239_v34  ;;  %v3414_v8 = vunpack.i.h.bf16 %v3412_v40  ;;  %v3413_v9 = vunpack.i.l.bf16 %v3412_v40 }
 0x3a4   : > { %v3404_v55 = vunpack.i.h.bf16 %v3402_v43  ;;  %v3403_v57 = vunpack.i.l.bf16 %v3402_v43 }
 0x3a5   : > { %3196 = vmatmul.mubr.msk.f32.vlgmr.msra.gmra.mrb[6].mxu0 %vm2086_vm0, %v3193_v41  ;;  %v2472_v20 = vsel %vm2470_vm1, %v3413_v9, %v3414_v8  ;;  %v3212_v8 = vld [vmem:[%s3959_s5 + $0x1c] sm:$0xf] }
 0x3a6   : > { %3244 = vmatpush1.bf16.msk.msra.mxu0 %vm3790_vm14, %v3242_v42  ;;  %v3422_v44 = vpop.permute.xlu1 %3421  ;;  %2255 = vmatprep.mubr.f32.mxu0 %v3491_v0  ;;  %v2675_v38 = vsel %vm2673_vm3, %v3403_v57, %v3404_v55 }
 0x3a7   : > { %v3407_v45 = vpop.permute.xlu0 %3406  ;;  %v3424_v49 = vunpack.i.h.bf16 %v3422_v44  ;;  %v3423_v50 = vunpack.i.l.bf16 %v3422_v44 }
 0x3a8   : > { %v3409_v61 = vunpack.i.h.bf16 %v3407_v45  ;;  %v3408_v62 = vunpack.i.l.bf16 %v3407_v45 }
 0x3a9   : > { %v2677_v1 = vsel %vm2673_vm3, %v3423_v50, %v3424_v49 }
 0x3aa   : > { %v3846_v51 = vpop.permute.xlu1 %3426  ;;  %v3269_v10 = vpack.c.bf16 %v2677_v1, %v2675_v38  ;;  %v2676_v11 = vsel %vm2673_vm3, %v3409_v61, %v3423_v50  ;;  %v2674_v12 = vsel %vm2673_vm3, %v3408_v62, %v3403_v57 }
 0x3ab   : > { %v3417_v54 = vpop.permute.xlu0 %3416  ;;  %v3272_v17 = vpack.c.bf16 %v2676_v11, %v2674_v12  ;;  %v3429_v21 = vunpack.i.h.bf16 %v3846_v51  ;;  %v3428_v22 = vunpack.i.l.bf16 %v3846_v51 }
 0x3ac   : > { %v3419_v58 = vunpack.i.h.bf16 %v3417_v54  ;;  %v3418_v59 = vunpack.i.l.bf16 %v3417_v54 }
 0x3ad   : > { %3199 = vmatmul.mubr.msk.f32.vlgmr.msra.gmra.mrb[6].mxu0 %vm2086_vm0, %v2059_v52  ;;  %v2772_v41 = vsel %vm2770_vm2, %v3428_v22, %v3429_v21 }
 0x3ae   : > { %v2290_v2 = vsel %vm2177_vm15, %v3399_v53, %v3418_v59  ;;  %v2291_v35 = vsel %vm2177_vm15, %v3418_v59, %v3419_v58  ;;  %v3432_v3 = vpop.permute.xlu1 %3431  ;;  %2365 = vmatprep.mubr.f32.mxu0 %v3491_v0 }
 0x3af   : > { %v3245_v37 = vpack.c.bf16 %v2291_v35, %v2289_v60  ;;  %v3248_v4 = vpack.c.bf16 %v2290_v2, %v2288_v63  ;;  %v3437_v5 = vpop.permute.xlu0 %3436  ;;  %v3434_v13 = vunpack.i.h.bf16 %v3432_v3  ;;  %v3433_v14 = vunpack.i.l.bf16 %v3432_v3  ;;  %v3216_v63 = vld [vmem:[%s3959_s5 + $0x8] sm:$0xf] }
 0x3b0   : > { %v3438_v24 = vunpack.i.l.bf16 %v3437_v5  ;;  %v3439_v36 = vunpack.i.h.bf16 %v3437_v5 }
 0x3b1   : > { %3247 = vmatprep.subr.msk.bf16.mxu0 %vm3790_vm14, %v3245_v37  ;;  %v2471_v23 = vsel %vm2470_vm1, %v3433_v14, %v3413_v9 }
 0x3b2   : > { %3250 = vmatpush1.bf16.msk.msra.mxu0 %vm3790_vm14, %v3248_v4  ;;  %v3442_v0 = vpop.permute.xlu1 %3441  ;;  %v2771_v44 = vsel %vm2770_vm2, %v3438_v24, %v3428_v22  ;;  %v3139_v24 = vsel %vm400_vm6, 1.0, %v3879_v28 }
 0x3b3   : > { %v3457_v16 = vpop.permute.xlu0 %3456  ;;  %3271 = vmatprep.subr.msk.bf16.mxu0 %vm3790_vm14, %v3269_v10  ;;  %v3444_v42 = vunpack.i.h.bf16 %v3442_v0  ;;  %v3443_v43 = vunpack.i.l.bf16 %v3442_v0  ;;  %v3224_v0 = vld [vmem:[%s3959_s5 + $0x20] sm:$0xf] }
 0x3b4   : > { %v3459_v18 = vunpack.i.h.bf16 %v3457_v16  ;;  %v3458_v19 = vunpack.i.l.bf16 %v3457_v16 }
 0x3b5   : > { %3203 = vmatmul.mubr.msk.f32.vlgmr.msra.gmra.mrb[6].mxu0 %vm2086_vm0, %v3200_v15  ;;  %v2570_v57 = vsel %vm2470_vm1, %v3443_v43, %v3444_v42 }
 0x3b6   : > { %v2473_v25 = vsel %vm2470_vm1, %v3434_v13, %v3458_v19  ;;  %v2474_v26 = vsel %vm2470_vm1, %v3458_v19, %v3459_v18  ;;  %3274 = vmatpush1.bf16.msk.msra.mxu0 %vm3790_vm14, %v3272_v17  ;;  %v3447_v27 = vpop.permute.xlu1 %3446  ;;  %2751 = vmatprep.mubr.f32.mxu0 %v3879_v28  ;;  %v3129_v17 = vsel %vm370_vm4, 1.0, %v3879_v28  ;;  %v3130_v18 = vsel %vm371_vm5, 1.0, %v3879_v28 }
 0x3b7   : > { %v3257_v30 = vpack.c.bf16 %v2474_v26, %v2472_v20  ;;  %v3260_v33 = vpack.c.bf16 %v2473_v25, %v2471_v23  ;;  %v3462_v34 = vpop.permute.xlu0 %3461  ;;  %v3449_v59 = vunpack.i.h.bf16 %v3447_v27  ;;  %v3448_v60 = vunpack.i.l.bf16 %v3447_v27 }
 0x3b8   : > { %v3464_v39 = vunpack.i.h.bf16 %v3462_v34  ;;  %v3463_v40 = vunpack.i.l.bf16 %v3462_v34  ;;  %v3140_v25 = vsel %vm401_vm7, 1.0, %v3879_v28 }
 0x3b9   : > { %3259 = vmatprep.subr.msk.bf16.mxu1 %vm3790_vm14, %v3257_v30  ;;  %3220 = vmatmul.mubr.msk.f32.vlgmr.msra.gmra.mrb[8].mxu0 %vm2086_vm0, %v3217_v29  ;;  %v2870_v4 = vsel %vm2770_vm2, %v3448_v60, %v3449_v59 }
 0x3ba   : > { %v2773_v45 = vsel %vm2770_vm2, %v3439_v36, %v3463_v40  ;;  %v2774_v46 = vsel %vm2770_vm2, %v3463_v40, %v3464_v39  ;;  %3262 = vmatpush1.bf16.msk.msra.mxu1 %vm3790_vm14, %v3260_v33  ;;  %v3452_v47 = vpop.permute.xlu1 %3451  ;;  %2848 = vmatprep.mubr.f32.mxu0 %v3879_v28 }
 0x3bb   : > { %v3275_v49 = vpack.c.bf16 %v2774_v46, %v2772_v41  ;;  %v3278_v50 = vpack.c.bf16 %v2773_v45, %v2771_v44  ;;  %v3454_v51 = vunpack.i.h.bf16 %v3452_v47  ;;  %v3453_v52 = vunpack.i.l.bf16 %v3452_v47  ;;  %v3467_v53 = vpop.permute.xlu0 %3466  ;;  %v2981_v46 = vld [vmem:[%s3961_s7] sm:$0x1f] }
 0x3bc   : > { %v3469_v54 = vunpack.i.h.bf16 %v3467_v53  ;;  %v3468_v55 = vunpack.i.l.bf16 %v3467_v53 }
 0x3bd   : > { %v2569_v58 = vsel %vm2470_vm1, %v3453_v52, %v3443_v43  ;;  %3211 = vmatmul.mubr.msk.f32.vlgmr.msra.gmra.mrb[8].mxu1 %vm2086_vm0, %v3204_v48  ;;  %3277 = vmatprep.subr.msk.bf16.mxu0 %vm3790_vm14, %v3275_v49 }
 0x3be   : > { %v2571_v61 = vsel %vm2470_vm1, %v3454_v51, %v3468_v55  ;;  %v2572_v62 = vsel %vm2470_vm1, %v3468_v55, %v3469_v54  ;;  %3280 = vmatpush1.bf16.msk.msra.mxu0 %vm3790_vm14, %v3278_v50  ;;  %2646 = vmatprep.mubr.f32.mxu1 %v3879_v28 }
 0x3bf   : > { %v3263_v1 = vpack.c.bf16 %v2572_v62, %v2570_v57  ;;  %v3266_v2 = vpack.c.bf16 %v2571_v61, %v2569_v58  ;;  %v3472_v35 = vpop.permute.xlu0 %3471 }
 0x3c0   : > { %v3474_v3 = vunpack.i.h.bf16 %v3472_v35  ;;  %v3473_v37 = vunpack.i.l.bf16 %v3472_v35 }
 0x3c1   : > { %3265 = vmatprep.subr.msk.bf16.mxu1 %vm3790_vm14, %v3263_v1  ;;  %3223 = vmatmul.mubr.msk.f32.vlgmr.msra.gmra.mrb[8].mxu0 %vm2086_vm0, %v3216_v63 }
 0x3c2   : > { %v2872_v5 = vsel %vm2770_vm2, %v3473_v37, %v3474_v3  ;;  %3268 = vmatpush1.bf16.msk.msra.mxu1 %vm3790_vm14, %v3266_v2  ;;  %2946 = vmatprep.mubr.f32.mxu0 %v3879_v28 }
 0x3c3   : > { %v3281_v38 = vpack.c.bf16 %v2872_v5, %v2870_v4  ;;  %v3477_v9 = vpop.permute.xlu0 %3476 }
 0x3c4   : > { %v3479_v10 = vunpack.i.h.bf16 %v3477_v9  ;;  %v3478_v11 = vunpack.i.l.bf16 %v3477_v9 }
 0x3c5   : > { %3215 = vmatmul.mubr.msk.f32.vlgmr.msra.gmra.mrb[8].mxu1 %vm2086_vm0, %v3212_v8  ;;  %3283 = vmatprep.subr.msk.bf16.mxu0 %vm3790_vm14, %v3281_v38 }
 0x3c6   : > { %v2869_v12 = vsel %vm2770_vm2, %v3478_v11, %v3448_v60  ;;  %v2871_v13 = vsel %vm2770_vm2, %v3479_v10, %v3473_v37  ;;  %3056 = vmatprep.mubr.f32.mxu1 %v3879_v28 }
 0x3c7   : > { %v3284_v14 = vpack.c.bf16 %v2871_v13, %v2869_v12 }
 0x3c9   : > { %3286 = vmatpush1.bf16.msk.msra.mxu0 %vm3790_vm14, %v3284_v14 }
 0x3cb   : > { %v2963_v33 = vpop.permute.xlu1 %2962 }
 0x3cc   : > { %3227 = vmatmul.mubr.msk.f32.vlgmr.msra.gmra.mrb[8].mxu0 %vm2086_vm0, %v3224_v0 }
 0x3d4   : > { %v2986_v47 = vpop.permute.xlu0 %2985 }
 0x488   : > { %v2367_v15 = vpop.f32.mrb[6].mxu0 }
 0x489   : > { %v2369_v16 = vpop.f32.mrb[7].mxu0  ;;  %v2374_v19 = vmul.f32 %v3129_v17, %v2367_v15 }
 0x48a   : > { %v2375_v20 = vmul.f32 %v3130_v18, %v2369_v16 }
 0x498   : > { %v2648_v56 = vpop.f32.mrb[8].mxu1 }
 0x499   : > { %v2655_v21 = vadd.f32 %v2648_v56, %v2374_v19  ;;  %v2650_v22 = vpop.f32.mrb[9].mxu1 }
 0x49a   : > { %v2656_v23 = vadd.f32 %v2650_v22, %v2375_v20 }
 0x49f   : > { %v2948_v26 = vpop.f32.mrb[8].mxu0 }
 0x4a0   : > { %v2955_v27 = vmul.f32 %v3139_v24, %v2948_v26  ;;  %v2950_v29 = vpop.f32.mrb[9].mxu0 }
 0x4a1   : > { %v2956_v30 = vmul.f32 %v3140_v25, %v2950_v29 }
 0x4a2   : > { %v2957_v34 = vadd.f32 %v2955_v27, %v2655_v21 }
 0x4a3   : > { %v2958_v36 = vadd.f32 %v2956_v30, %v2656_v23 }
 0x4a4   : > { %v2965_v39 = vadd.f32 %v2963_v33, %v2957_v34 }
 0x4a5   : > { %v2966_v40 = vadd.f32 %v2963_v33, %v2958_v36 }
 0x4a6   : > { %v2967_v41 = vmax.f32 %v2965_v39, 0.0 }
 0x4a7   : > { %v2968_v42 = vmax.f32 %v2966_v40, 0.0 }
 0x4a8   : > { %v2971_v43 = vrot.slane %v2967_v41, 4 }
 0x4a9   : > { %v2972_v6 = vrot.slane %v2968_v42, 4 }
 0x4aa   : > { %2975 = vst [vmem:[#allocation2 + $0x28] sm:$0xf0] %v2971_v43 }
 0x4ab   : > { %2976 = vst [vmem:[#allocation2 + $0x30] sm:$0xf0] %v2972_v6 }
 0x4b1   : > { %v2979_v7 = vld [vmem:[#allocation2 + $0x28] sm:$0xff] }
 0x4b2   : > { %v2980_v44 = vld [vmem:[#allocation2 + $0x30] sm:$0xff]  ;;  %v3289_v45 = vpack.c.bf16 %v2979_v7, %v3683_v31 }
 0x4b3   : > { %v3287_v28 = vpack.c.bf16 %v2980_v44, %v3688_v32 }
 0x4b5   : > { %3288 = vmatprep.subr.bf16.mxu1 %v3287_v28 }
 0x4b6   : > { %3290 = vmatpush1.bf16.msra.mxu1 %v3289_v45 }
 0x4b9   : > { %3228 = vmatmul.mubr.msk.f32.vlgmr.msra.gmra.mrb[10].mxu1 %vm2988_vm8, %v2981_v46 }
 0x58c   : > { %v3058_v48 = vpop.f32.mrb[10].mxu1 }
 0x58d   : > { %v3059_v49 = vadd.f32 %v3058_v48, %v2986_v47  ;;  %v3060_v50 = vpop.f32.mrb[11].mxu1 }
 0x58e   : > { %v3061_v32 = vadd.f32 %v3060_v50, %v2986_v47 }
 0x58f   : > { %3063 = vst [vmem:[%s332_s27] sm:$0x1f] %v3059_v49 }
 0x590   : > { %3064 = vst [vmem:[%s332_s27 + $0x8] sm:$0x1f] %v3061_v32 }
 0x591 PF: > { %s19_s30 = sadd.s32 1, %s3489_s30  }
 0x592   : > { %p16_p4 = scmp.ge.s32.totalorder %s19_s30, 4  }
 0x594   :  { %18 = sbr.rel (!%p16_p4) target bundleno = 1 (0x1), region = 110 }

</bundles_post_ra>
